<compile_context>
chip_gen: v5e
topology: v5e:2x2
jax: 0.10.0
libtpu: 0.0.40
codegen_flags: <defaults>
</compile_context>

<pallas_src>
import functools
import math

import jax
import jax.numpy as jnp
from jax.experimental import pallas as pl
from jax.experimental.pallas import tpu as pltpu


_XLA_FASTPATH_ELEMS = 1 << 16  # below this, pallas_call launch overhead dominates


def _pos_enc_kernel(ramp_ref, freq_ref, out_ref, *, pos_per_tile):
    # ramp_ref: (tile_rows, lanes) resident f32 == (local_pos + 1) * freq + phase
    # freq_ref: (1, lanes)        resident f32 == per-lane (normalize-folded) inv_freq
    # Per element: one broadcast add + one sin + one unmasked full-width store.
    base = (pl.program_id(0) * pos_per_tile).astype(jnp.float32)   # position offset of tile
    out_ref[...] = jnp.sin(ramp_ref[...] + base * freq_ref[...]).astype(out_ref.dtype)


def _num_tensorcores():
    """Best-effort TensorCores-per-device (v7x/v4/v5p -> 2, v5e/v6e -> 1)."""
    try:
        kind = jax.devices()[0].device_kind.lower()
    except Exception:
        return 1
    if "lite" in kind or "v5e" in kind or "v6e" in kind:
        return 1
    if any(tag in kind for tag in ("v7", "v4", "v5p")):
        return 2
    return 1


def _pick_tile_rows(n_rows, row_lanes, align, itemsize, num_cores):
    """Row-tile size for the flat (n_rows, row_lanes) output."""
    # VMEM budget: ramp (f32) + output tile, both conservatively double-buffered.
    budget = 12 << 20
    per_row = row_lanes * (4 + itemsize) * 2
    target = max(align, min(4096, budget // per_row))
    target = (target // align) * align

    if num_cores <= 1:
        # v5e / v6e: one TensorCore -> biggest single block that fits the budget.
        return n_rows if n_rows <= target else target

    # 2-TC chips (v7x): "parallel" shards the grid axis across cores, so aim for
    # an even number of near-equal blocks (>= 2), each <= target.
    if n_rows <= 4 * align:
        return n_rows
    nblk = max(2, pl.cdiv(n_rows, target))
    nblk += nblk % 2
    tile = max(align, pl.cdiv(pl.cdiv(n_rows, nblk), align) * align)
    return min(tile, n_rows)


def _xla_forward(x_len, keep_ch, channels, temperature, normalize, scale, dtype):
    dim_t = jnp.arange(0, channels, 2, dtype=jnp.float32)
    inv_freq = 1.0 / (temperature ** (dim_t / channels))
    pos_x = jnp.arange(1, x_len + 1, dtype=jnp.float32)
    if normalize:
        pos_x = pos_x / (pos_x[-1] + 1e-6) * scale
    sin_inp = pos_x[:, None] * inv_freq[None, :]
    emb_x = jnp.concatenate([jnp.sin(sin_inp), jnp.cos(sin_inp)], axis=-1)
    return emb_x.astype(dtype)[:, :keep_ch]


def positional_encoding_1d(tensor, num_pos_feats=64, temperature=10000,
                           normalize=False, scale=None, *, force_pallas=False):
    """Pallas equivalent of PositionalEncoding1D(num_pos_feats, ...).forward(tensor)."""
    if tensor.ndim != 2:
        raise RuntimeError("The input tensor has to be 2D!")
    if scale is not None and normalize is False:
        raise ValueError("normalize should be True if scale is passed")
    if scale is None:
        scale = 2 * math.pi

    x_len, orig_ch = tensor.shape
    channels = num_pos_feats
    assert channels % 2 == 0, "num_pos_feats must be even (as in the PyTorch module)"
    half = channels // 2
    out_dtype = tensor.dtype
    keep_ch = min(orig_ch, channels)    # PyTorch: emb[:, :orig_ch] of a (len, channels) buffer

    # Small-size fast path: let XLA fuse tiny encodings instead of paying launch cost.
    if not force_pallas and x_len * channels <= _XLA_FASTPATH_ELEMS:
        return _xla_forward(x_len, keep_ch, channels, temperature, normalize, scale, out_dtype)

    # inv_freq with normalize/scale folded in:  (p * s) * f == p * (s * f).
    dim_t = jnp.arange(0, channels, 2, dtype=jnp.float32)
    inv_freq = 1.0 / (temperature ** (dim_t / channels))                 # (half,)
    if normalize:
        inv_freq = inv_freq * (float(scale) / (float(x_len) + 1e-6))

    # ---- lane-dense flat layout ------------------------------------------------
    # Pad channels to a divisor of 128 (or multiple of 128) so the row-major
    # (len, padded_ch) buffer maps exactly onto full 128-lane rows.
    if channels <= 128:
        padded_ch = next(d for d in (2, 4, 8, 16, 32, 64, 128) if d >= channels)
    else:
        padded_ch = ((channels + 127) // 128) * 128
    pos_per_row = max(1, 128 // padded_ch)
    row_lanes = padded_ch * pos_per_row                                  # 128 or multiple of 128
    n_rows = pl.cdiv(x_len, pos_per_row)                                 # flat output rows
    total_pos = n_rows * pos_per_row

    itemsize = jnp.dtype(out_dtype).itemsize
    align = max(8, 32 // itemsize)                                       # 8 f32, 16 bf16
    tile_rows = _pick_tile_rows(n_rows, row_lanes, align, itemsize, _num_tensorcores())
    grid = (pl.cdiv(n_rows, tile_rows),)
    pos_per_tile = tile_rows * pos_per_row

    # ---- resident tables: ALL per-element arithmetic hoisted out of the kernel --
    freq_pad = jnp.zeros((padded_ch,), jnp.float32)
    freq_pad = freq_pad.at[:half].set(inv_freq).at[half:channels].set(inv_freq)
    phase_pad = jnp.zeros((padded_ch,), jnp.float32).at[half:channels].set(math.pi / 2)
    freq_row = jnp.tile(freq_pad, (pos_per_row,))                        # (row_lanes,)
    phase_row = jnp.tile(phase_pad, (pos_per_row,))

    lane = jnp.arange(row_lanes, dtype=jnp.int32)
    p_loc = (jnp.arange(tile_rows, dtype=jnp.float32)[:, None] * float(pos_per_row)
             + (lane // padded_ch).astype(jnp.float32)[None, :])         # tile-local position
    ramp = (p_loc + 1.0) * freq_row[None, :] + phase_row[None, :]        # 1-based positions
    freq_row2d = freq_row[None, :]                                       # (1, row_lanes)

    cost = pl.CostEstimate(
        flops=2 * n_rows * row_lanes,
        transcendentals=n_rows * row_lanes,
        bytes_accessed=n_rows * row_lanes * itemsize + ramp.size * 4 + row_lanes * 4,
    )

    flat = pl.pallas_call(
        functools.partial(_pos_enc_kernel, pos_per_tile=pos_per_tile),
        out_shape=jax.ShapeDtypeStruct((n_rows, row_lanes), out_dtype),
        grid=grid,
        in_specs=[
            pl.BlockSpec((tile_rows, row_lanes), lambda i: (0, 0)),      # ramp, resident
            pl.BlockSpec((1, row_lanes), lambda i: (0, 0)),              # freq row, resident
        ],
        out_specs=pl.BlockSpec((tile_rows, row_lanes), lambda i: (i, 0)),
        compiler_params=pltpu.CompilerParams(dimension_semantics=("parallel",)),
        cost_estimate=cost,
    )(ramp, freq_row2d)

    # Row-major flat buffer == (total_pos, padded_ch); contiguous reshape, then slice
    # off padding positions / channels.  (If keep_ch < padded_ch this is one extra
    # read+write pass; it only triggers for non-standard channel counts.)
    emb = flat.reshape(total_pos, padded_ch)
    if total_pos != x_len or padded_ch != keep_ch:
        emb = emb[:x_len, :keep_ch]
    return emb


def _reference(tensor, num_pos_feats=64, temperature=10000, normalize=False, scale=None):
    if scale is None:
        scale = 2 * math.pi
    x_len, orig_ch = tensor.shape
    return _xla_forward(x_len, min(orig_ch, num_pos_feats), num_pos_feats,
                        temperature, normalize, scale, tensor.dtype)


if __name__ == "__main__":
    key = jax.random.PRNGKey(0)
    # Input is used only for its shape (len, c) and dtype, as in the PyTorch module.
    x = jax.random.normal(key, (128, 64), dtype=jnp.float32)

    # Lane-dense path (channels=64 -> 2 positions per 128-lane row).
    out = jax.block_until_ready(positional_encoding_1d(x, num_pos_feats=64, force_pallas=True))
    ref = _reference(x, num_pos_feats=64)
    assert out.shape == (128, 64) and out.dtype == x.dtype
    assert jnp.allclose(out, ref, atol=1e-4, rtol=1e-5)

    # normalize=True (scale folded into the frequency table / ramp).
    out_n = jax.block_until_ready(
        positional_encoding_1d(x, num_pos_feats=64, normalize=True, force_pallas=True))
    ref_n = _reference(x, num_pos_feats=64, normalize=True)
    assert jnp.allclose(out_n, ref_n, atol=1e-4, rtol=1e-5)

    # Odd sequence length: still lane-dense, handled by cdiv tail + wrapper slice.
    y = jax.random.normal(key, (129, 64), dtype=jnp.float32)
    out_o = jax.block_until_ready(positional_encoding_1d(y, num_pos_feats=64, force_pallas=True))
    assert out_o.shape == (129, 64)
    assert jnp.allclose(out_o, _reference(y, num_pos_feats=64), atol=1e-4, rtol=1e-5)

    # channels that don't divide 128: padded to 64 lanes/position, sliced back.
    z = jax.random.normal(key, (64, 48), dtype=jnp.float32)
    out_c = jax.block_until_ready(positional_encoding_1d(z, num_pos_feats=48, force_pallas=True))
    assert out_c.shape == (64, 48)
    assert jnp.allclose(out_c, _reference(z, num_pos_feats=48), atol=1e-4, rtol=1e-5)

    # orig_ch < channels (PyTorch returns emb[:, :orig_ch]).
    w = jax.random.normal(key, (64, 32), dtype=jnp.float32)
    out_w = jax.block_until_ready(positional_encoding_1d(w, num_pos_feats=64, force_pallas=True))
    assert out_w.shape == (64, 32)
    assert jnp.allclose(out_w, _reference(w, num_pos_feats=64), atol=1e-4, rtol=1e-5)

    # bf16 output dtype (kernel computes in f32, casts at the store).
    xb = x.astype(jnp.bfloat16)
    out_b = jax.block_until_ready(positional_encoding_1d(xb, num_pos_feats=64, force_pallas=True))
    assert out_b.dtype == jnp.bfloat16
    assert jnp.allclose(out_b.astype(jnp.float32),
                        _reference(xb, num_pos_feats=64).astype(jnp.float32),
                        atol=2e-2, rtol=0.0)

    # Tiny workload auto-routes to the XLA fast path.
    t = jax.random.normal(key, (16, 64), dtype=jnp.float32)
    out_t = jax.block_until_ready(positional_encoding_1d(t, num_pos_feats=64))
    assert jnp.allclose(out_t, _reference(t, num_pos_feats=64), atol=1e-4, rtol=1e-5)

    print("KERNEL_OK")
</pallas_src>

<mosaic_0001>
module attributes {stable_mosaic.version = 11 : i64} {
  func.func @_pos_enc_kernel(%arg0: i32, %arg1: memref<64x128xf32, #tpu.memory_space<vmem>>, %arg2: memref<1x128xf32, #tpu.memory_space<vmem>>, %arg3: memref<64x128xf32, #tpu.memory_space<vmem>>) attributes {dimension_semantics = [#tpu.dimension_semantics<parallel>], iteration_bounds = array<i64: 1>, scalar_prefetch = 0 : i64, scratch_operands = 0 : i64, tpu.core_type = #tpu.core_type<tc>, window_params = [{pipeline_mode = #tpu.pipeline_mode<synchronous>, transform_indices = @transform_0, window_bounds = array<i64: 64, 128>}, {pipeline_mode = #tpu.pipeline_mode<synchronous>, transform_indices = @transform_1, window_bounds = array<i64: 1, 128>}, {transform_indices = @transform_2, window_bounds = array<i64: 64, 128>}]} {
    %c128_i32 = arith.constant 128 : i32
    %0 = arith.muli %arg0, %c128_i32 : i32
    %1 = arith.sitofp %0 : i32 to f32
    %c0 = arith.constant 0 : index
    %c0_0 = arith.constant 0 : index
    %2 = vector.load %arg1[%c0, %c0_0] : memref<64x128xf32, #tpu.memory_space<vmem>>, vector<64x128xf32>
    %c0_1 = arith.constant 0 : index
    %c0_2 = arith.constant 0 : index
    %3 = vector.load %arg2[%c0_1, %c0_2] : memref<1x128xf32, #tpu.memory_space<vmem>>, vector<1x128xf32>
    %4 = vector.broadcast %1 : f32 to vector<1x128xf32>
    %5 = arith.mulf %4, %3 : vector<1x128xf32>
    %6 = vector.broadcast %5 : vector<1x128xf32> to vector<64x128xf32>
    %7 = arith.addf %2, %6 : vector<64x128xf32>
    %8 = math.sin %7 : vector<64x128xf32>
    %c0_3 = arith.constant 0 : index
    %c0_4 = arith.constant 0 : index
    %9 = vector.load %arg3[%c0_3, %c0_4] : memref<64x128xf32, #tpu.memory_space<vmem>>, vector<64x128xf32>
    tpu.vector_store %arg3[%c0_3, %c0_4], %8 {strides = array<i32>} : memref<64x128xf32, #tpu.memory_space<vmem>>, vector<64x128xf32>,
    return
  }
  func.func @transform_0(%arg0: i32) -> (i32, i32) {
    %c0_i32 = arith.constant 0 : i32
    %c0_i32_0 = arith.constant 0 : i32
    %c0_i32_1 = arith.constant 0 : i32
    return %c0_i32, %c0_i32_0 : i32, i32
  }
  func.func @transform_1(%arg0: i32) -> (i32, i32) {
    %c0_i32 = arith.constant 0 : i32
    %c0_i32_0 = arith.constant 0 : i32
    %c0_i32_1 = arith.constant 0 : i32
    return %c0_i32, %c0_i32_0 : i32, i32
  }
  func.func @transform_2(%arg0: i32) -> (i32, i32) {
    %c0_i32 = arith.constant 0 : i32
    %c0_i32_0 = arith.constant 0 : i32
    return %arg0, %c0_i32 : i32, i32
  }
}

</mosaic_0001>

<bundles_post_ra>
// kernel: tpu_custom_call.1
= control target key start
LH: loop header
LB: loop body
LE: loop exit
PB: predicated region body
PF: predicated region fallthrough
CT: control target
= control target key end

     0   :  { %7 = vsyncpa [#allocation3], 0  ;;  %s2365_s0 = inlined_call_operand.hbm [shape: f32[64,128], index: 0, kind: input, shape index: {}]   ;;  %s2366_s1 = inlined_call_operand.hbm [shape: f32[1,128], index: 1, kind: input, shape index: {}]   ;;  %s2367_s2 = inlined_call_operand.hbm [shape: f32[64,128], index: 2, kind: output, shape index: {}]  }
   0x1   :  { %8 = vsyncpa [#allocation6], 0 }
   0x2   :  { %9 = vsyncpa [#allocation4], 0  ;;  %s14_s11 = sshll.u32 %s2365_s0, 4  ;;  %s1448_s12 = smov [#allocation2]   ;;  %s15_s11 = int_to_ptr.hbm [resolvable:$true] %s14_s11 }
   0x3   :  { %s16_s13 = sshll.u32 %s1448_s12, 4  ;;  %s28_s16 = sshll.u32 %s2366_s1, 4  ;;  %s17_s13 = int_to_ptr.vmem [resolvable:$true] %s16_s13  ;;  %s29_s16 = int_to_ptr.hbm [resolvable:$true] %s28_s16 }
   0x4   :  { %s1449_s17 = smov 128   ;;  %s1450_s18 = smov 8  }
   0x5   :  { %22 = dma.hbm_to_vmem [thread:$0]  %s15_s11, 1024, %s17_s13, [#allocation3], %s1449_s17, %s1449_s17, %s1450_s18  }
   0x6   :  { %s1451_s19 = smov [#allocation5]  }
   0x7   :  { %s30_s20 = sshll.u32 %s1451_s19, 4  ;;  %s31_s20 = int_to_ptr.vmem [resolvable:$true] %s30_s20 }
   0x8   :  { %33 = dma.hbm_to_vmem [thread:$0]  %s29_s16, 16, %s31_s20, [#allocation6]  }
   0x9   :  { %1442 = dma.done.wait [#allocation3], 1024  }
   0xa   :  { %1443 = vsyncadd [#allocation3], 4294966272 }
   0xb   :  { %1444 = dma.done.wait [#allocation6], 16  }
   0xc   :  { %1445 = vsyncadd [#allocation6], 4294967280  ;;  %v52_v0 = vld [vmem:[#allocation5] sm:$0x1]  ;;  %v45_v3 = vld [vmem:[#allocation2 + $0x8] sm:$0xff]  ;;  %s1459_s0 = smov [#allocation7]  }
   0xd   :  { %v54_v1 = vmul.f32 0.0, %v52_v0  ;;  %v44_v2 = vld [vmem:[#allocation2] sm:$0xff]  ;;  %v46_v4 = vld [vmem:[#allocation2 + $0x10] sm:$0xff]  ;;  %v1452_v34 = vmov 683565275   ;;  %s1318_s1 = sshll.u32 %s1459_s0, 4  ;;  %s1319_s1 = int_to_ptr.vmem [resolvable:$true] %s1318_s1 }
   0xe   :  { %v1453_v36 = vmov 2475754826   ;;  %v1454_v38 = vmov 2131351028   ;;  %v1455_v40 = vmov 2102212464  }
   0xf   :  { %v1484_v5 = vperm.slane %v54_v1, 0  ;;  %v1456_v42 = vmov 920167782   ;;  %v1457_v51 = vmov 1326507024   ;;  %s1320_s23 = sshll.u32 %s2367_s2, 4  ;;  %s1321_s23 = int_to_ptr.hbm [resolvable:$true] %s1320_s23 }
  0x11   :  { %v1487_v6 = vadd.f32 %v1484_v5, %v44_v2  ;;  %v1490_v7 = vadd.f32 %v1484_v5, %v45_v3  ;;  %v1493_v8 = vadd.f32 %v1484_v5, %v46_v4 }
  0x13   :  { %v66_v9 = vand.u32 2147483647, %v1487_v6  ;;  %v69_v10 = vand.u32 2139095040, %v1487_v6  ;;  %v221_v11 = vand.u32 2147483647, %v1490_v7  ;;  %v224_v12 = vand.u32 2139095040, %v1490_v7 }
  0x14   :  { %v379_v13 = vand.u32 2139095040, %v1493_v8 }
  0x15   :  { %v70_v14 = vshrl.u32 %v69_v10, 23  ;;  %v73_v15 = vand.u32 8388607, %v66_v9  ;;  %v225_v16 = vshrl.u32 %v224_v12, 23  ;;  %v228_v17 = vand.u32 8388607, %v221_v11 }
  0x16   :  { %v380_v21 = vshrl.u32 %v379_v13, 23 }
  0x17   :  { %v1334_v18 = vadd.s32 4294967169, %v70_v14  ;;  %v74_v19 = vor.u32 8388608, %v73_v15  ;;  %v1337_v20 = vadd.s32 4294967169, %v225_v16  ;;  %v229_v23 = vor.u32 8388608, %v228_v17 }
  0x18   :  { %v1340_v27 = vadd.s32 4294967169, %v380_v21 }
  0x19   :  { %v76_v22 = vadd.s32 1, %v1334_v18  ;;  %v231_v24 = vadd.s32 1, %v1337_v20  ;;  %v1504_v26 = vshll.u32 %v74_v19, 8  ;;  %v1510_v32 = vshll.u32 %v229_v23, 8 }
  0x1a   :  { %v1518_v45 = vadd.s32 1, %v1340_v27 }
  0x1b   :  { %vm77_vm0 = vcmp.gt.s32.totalorder %v76_v22, 0  ;;  %vm232_vm1 = vcmp.gt.s32.totalorder %v231_v24, 0  ;;  %v115_v44 = vand.u32 65535, %v1504_v26  ;;  %v116_v49 = vshrl.u32 %v1504_v26, 16 }
  0x1c   :  { %v78_v25 = vsel %vm77_vm0, %v76_v22, 0  ;;  %v233_v29 = vsel %vm232_vm1, %v231_v24, 0  ;;  %vm387_vm15 = vcmp.gt.s32.totalorder %v1518_v45, 0 }
  0x1d   :  { %v80_v28 = vand.u32 31, %v78_v25  ;;  %v1506_v30 = vshrl.u32 %v78_v25, 5  ;;  %v1508_v31 = vand.u32 31, %v233_v29  ;;  %v1538_v62 = vshrl.u32 %v233_v29, 5 }
  0x1f   :  { %v81_v33 = vsub.s32 32, %v80_v28  ;;  %v83_v35 = vshll.u32 %v1452_v34, %v80_v28  ;;  %v86_v37 = vshll.u32 %v1453_v36, %v80_v28  ;;  %v89_v39 = vshll.u32 %v1454_v38, %v80_v28 }
  0x20   :  { %v92_v41 = vshll.u32 %v1455_v40, %v80_v28  ;;  %v95_v43 = vshll.u32 %v1456_v42, %v80_v28  ;;  %vm98_vm2 = vcmp.lt.s32.totalorder %v1506_v30, 1  ;;  %vm101_vm3 = vcmp.lt.s32.totalorder %v1506_v30, 4 }
  0x21   :  { %v84_v46 = vshrl.u32 %v1453_v36, %v81_v33  ;;  %v87_v47 = vshrl.u32 %v1454_v38, %v81_v33  ;;  %v90_v48 = vshrl.u32 %v1455_v40, %v81_v33  ;;  %v93_v50 = vshrl.u32 %v1456_v42, %v81_v33 }
  0x22   :  { %v96_v52 = vshrl.u32 %v1457_v51, %v81_v33  ;;  %v1529_v56 = vsub.s32 32, %v1508_v31  ;;  %v82_v57 = vshrl.u32 %v1452_v34, %v81_v33  ;;  %vm100_vm4 = vcmp.lt.s32.totalorder %v1506_v30, 3 }
  0x23   :  { %v85_v53 = vor.u32 %v84_v46, %v83_v35  ;;  %v88_v54 = vor.u32 %v87_v47, %v86_v37  ;;  %v91_v55 = vor.u32 %v90_v48, %v89_v39  ;;  %v94_v58 = vor.u32 %v93_v50, %v92_v41 }
  0x24   :  { %v97_v59 = vor.u32 %v96_v52, %v95_v43  ;;  %vm99_vm5 = vcmp.lt.s32.totalorder %v1506_v30, 2  ;;  %v238_v1 = vshll.u32 %v1452_v34, %v1508_v31  ;;  %v241_v2 = vshll.u32 %v1453_v36, %v1508_v31 }
  0x25   :  { %v106_v60 = vsel %vm98_vm2, %v85_v53, %v88_v54  ;;  %v110_v61 = vsel %vm98_vm2, %v88_v54, %v91_v55  ;;  %v107_v63 = vsel %vm101_vm3, %v94_v58, 920167782  ;;  %v103_v3 = vsel %vm101_vm3, %v91_v55, 2102212464 }
  0x26   :  { %v111_v0 = vsel %vm101_vm3, %v97_v59, 1326507024  ;;  %v108_v4 = vsel %vm100_vm4, %v91_v55, %v107_v63  ;;  %v239_v12 = vshrl.u32 %v1453_v36, %v1529_v56  ;;  %v102_v13 = vsel %vm98_vm2, %v82_v57, %v85_v53 }
  0x27   :  { %v112_v10 = vsel %vm100_vm4, %v94_v58, %v111_v0  ;;  %v109_v14 = vsel %vm99_vm5, %v106_v60, %v108_v4  ;;  %v242_v16 = vshrl.u32 %v1454_v38, %v1529_v56  ;;  %v104_v21 = vsel %vm100_vm4, %v88_v54, %v103_v3 }
  0x28   :  { %v113_v15 = vsel %vm99_vm5, %v110_v61, %v112_v10  ;;  %v139_v19 = vand.u32 65535, %v109_v14  ;;  %v140_v20 = vshrl.u32 %v109_v14, 16  ;;  %v1566_v22 = vor.u32 %v239_v12, %v238_v1 }
  0x29   :  { %v117_v17 = vand.u32 65535, %v113_v15  ;;  %v118_v18 = vshrl.u32 %v113_v15, 16  ;;  %v1568_v23 = vor.u32 %v242_v16, %v241_v2  ;;  %v244_v24 = vshll.u32 %v1454_v38, %v1508_v31 }
  0x2a   :  { %v245_v29 = vshrl.u32 %v1455_v40, %v1529_v56  ;;  %v141_v35 = vmul.u32 %v139_v19, %v115_v44  ;;  %v142_v37 = vmul.u32 %v140_v20, %v115_v44  ;;  %v143_v39 = vmul.u32 %v139_v19, %v116_v49 }
  0x2b   :  { %v119_v25 = vmul.u32 %v117_v17, %v115_v44  ;;  %v120_v27 = vmul.u32 %v118_v18, %v115_v44  ;;  %v121_v28 = vmul.u32 %v117_v17, %v116_v49  ;;  %v122_v33 = vmul.u32 %v118_v18, %v116_v49 }
  0x2c   :  { %v144_v47 = vmul.u32 %v140_v20, %v116_v49  ;;  %v145_v50 = vshll.u32 %v142_v37, 16  ;;  %v146_v52 = vshrl.u32 %v142_v37, 16  ;;  %v147_v53 = vshll.u32 %v143_v39, 16 }
  0x2d   :  { %v123_v41 = vshll.u32 %v120_v27, 16  ;;  %v124_v43 = vshrl.u32 %v120_v27, 16  ;;  %v125_v46 = vshll.u32 %v121_v28, 16  ;;  %v126_v48 = vshrl.u32 %v121_v28, 16 }
  0x2e   :  { %v148_v55 = vshrl.u32 %v143_v39, 16  ;;  %v247_v57 = vshll.u32 %v1455_v40, %v1508_v31  ;;  %v1458_v58 = vmov 0   ;;  %vm149_vm7 = vc.u32 %v141_v35, %v145_v50 }
  0x2f   :  { %vm127_vm6 = vc.u32 %v119_v25, %v123_v41  ;;  %v129_v54 = vadd.s32 %v123_v41, %v119_v25  ;;  %v151_v44 = vadd.s32 %v145_v50, %v141_v35  ;;  %v248_v60 = vshrl.u32 %v1456_v42, %v1529_v56 }
  0x30   :  { %v128_v59 = vsel %vm127_vm6, 1, %v1458_v58  ;;  %v150_v49 = vsel %vm149_vm7, 1, %v1458_v58  ;;  %v250_v63 = vshll.u32 %v1456_v42, %v1508_v31  ;;  %v246_v2 = vor.u32 %v245_v29, %v244_v24 }
  0x31   :  { %v130_v61 = vadd.s32 %v128_v59, %v122_v33  ;;  %vm131_vm8 = vc.u32 %v129_v54, %v125_v46  ;;  %v152_v1 = vadd.s32 %v150_v49, %v144_v47  ;;  %vm153_vm9 = vc.u32 %v151_v44, %v147_v53 }
  0x32   :  { %v132_v0 = vsel %vm131_vm8, 1, %v1458_v58  ;;  %v154_v4 = vsel %vm153_vm9, 1, %v1458_v58  ;;  %v249_v10 = vor.u32 %v248_v60, %v247_v57  ;;  %v251_v12 = vshrl.u32 %v1457_v51, %v1529_v56 }
  0x33   :  { %v134_v3 = vadd.s32 %v132_v0, %v130_v61  ;;  %v1586_v14 = vadd.s32 %v151_v44, %v147_v53  ;;  %v156_v15 = vadd.s32 %v154_v4, %v152_v1  ;;  %vm253_vm10 = vcmp.lt.s32.totalorder %v1538_v62, 1 }
  0x34   :  { %vm255_vm11 = vcmp.lt.s32.totalorder %v1538_v62, 3  ;;  %v252_v16 = vor.u32 %v251_v12, %v250_v63  ;;  %vm254_vm12 = vcmp.lt.s32.totalorder %v1538_v62, 2  ;;  %vm256_vm13 = vcmp.lt.s32.totalorder %v1538_v62, 4 }
  0x35   :  { %v135_v31 = vadd.s32 %v134_v3, %v124_v43  ;;  %v105_v17 = vsel %vm99_vm5, %v102_v13, %v104_v21  ;;  %v157_v18 = vadd.s32 %v156_v15, %v146_v52  ;;  %v261_v19 = vsel %vm253_vm10, %v1566_v22, %v1568_v23 }
  0x36   :  { %v262_v20 = vsel %vm256_vm13, %v249_v10, 920167782  ;;  %v265_v27 = vsel %vm253_vm10, %v1568_v23, %v246_v2  ;;  %v270_v30 = vand.u32 65535, %v1510_v32  ;;  %v266_v28 = vsel %vm256_vm13, %v252_v16, 1326507024 }
  0x37   :  { %v1600_v24 = vadd.s32 %v135_v31, %v126_v48  ;;  %v263_v25 = vsel %vm255_vm11, %v246_v2, %v262_v20  ;;  %v158_v13 = vadd.s32 %v157_v18, %v148_v55  ;;  %v271_v29 = vshrl.u32 %v1510_v32, 16 }
  0x38   :  { %v264_v21 = vsel %vm254_vm12, %v261_v19, %v263_v25  ;;  %v159_v33 = vmul.u32 %v1504_v26, %v105_v17  ;;  %v267_v35 = vsel %vm255_vm11, %v249_v10, %v266_v28  ;;  %v237_v46 = vshrl.u32 %v1452_v34, %v1529_v56 }
  0x39   :  { %vm161_vm14 = vc.u32 %v1600_v24, %v1586_v14  ;;  %v294_v37 = vand.u32 65535, %v264_v21  ;;  %v162_v39 = vadd.s32 1, %v158_v13  ;;  %v268_v41 = vsel %vm254_vm12, %v265_v27, %v267_v35 }
  0x3a   :  { %v295_v43 = vshrl.u32 %v264_v21, 16  ;;  %v272_v47 = vand.u32 65535, %v268_v41  ;;  %v273_v48 = vshrl.u32 %v268_v41, 16  ;;  %v258_v50 = vsel %vm256_vm13, %v246_v2, 2102212464 }
  0x3b   :  { %v163_v26 = vsel %vm161_vm14, %v162_v39, %v158_v13  ;;  %v298_v53 = vmul.u32 %v294_v37, %v271_v29  ;;  %v296_v59 = vmul.u32 %v294_v37, %v270_v30  ;;  %v388_v61 = vsel %vm387_vm15, %v1518_v45, 0 }
  0x3c   :  { %v297_v52 = vmul.u32 %v295_v43, %v270_v30  ;;  %v164_v54 = vadd.s32 %v163_v26, %v159_v33  ;;  %v274_v55 = vmul.u32 %v272_v47, %v270_v30  ;;  %v275_v57 = vmul.u32 %v273_v48, %v270_v30 }
  0x3d   :  { %v276_v44 = vmul.u32 %v272_v47, %v271_v29  ;;  %v257_v56 = vsel %vm253_vm10, %v237_v46, %v1566_v22  ;;  %v277_v63 = vmul.u32 %v273_v48, %v271_v29  ;;  %v259_v1 = vsel %vm255_vm11, %v1568_v23, %v258_v50 }
  0x3e   :  { %v300_v60 = vshll.u32 %v297_v52, 16  ;;  %v165_v49 = vadd.s32 536870912, %v164_v54  ;;  %v278_v0 = vshll.u32 %v275_v57, 16  ;;  %v299_v3 = vmul.u32 %v295_v43, %v271_v29 }
  0x3f   :  { %v280_v2 = vshll.u32 %v276_v44, 16  ;;  %v302_v4 = vshll.u32 %v298_v53, 16  ;;  %v279_v45 = vshrl.u32 %v275_v57, 16  ;;  %v301_v18 = vshrl.u32 %v297_v52, 16 }
  0x40   :  { %v1632_v10 = vshrl.u32 %v165_v49, 30  ;;  %vm282_vm0 = vc.u32 %v274_v55, %v278_v0  ;;  %v284_v12 = vadd.s32 %v278_v0, %v274_v55  ;;  %vm304_vm1 = vc.u32 %v296_v59, %v300_v60 }
  0x41   :  { %v283_v15 = vsel %vm282_vm0, 1, %v1458_v58  ;;  %v305_v31 = vsel %vm304_vm1, 1, %v1458_v58  ;;  %v306_v22 = vadd.s32 %v300_v60, %v296_v59  ;;  %v390_v20 = vand.u32 31, %v388_v61 }
  0x42   :  { %v167_v16 = vshll.u32 %v1632_v10, 30  ;;  %v285_v17 = vadd.s32 %v283_v15, %v277_v63  ;;  %vm286_vm2 = vc.u32 %v284_v12, %v280_v2  ;;  %v307_v19 = vadd.s32 %v305_v31, %v299_v3 }
  0x43   :  { %v287_v23 = vsel %vm286_vm2, 1, %v1458_v58  ;;  %vm308_vm3 = vc.u32 %v306_v22, %v302_v4  ;;  %v281_v27 = vshrl.u32 %v276_v44, 16  ;;  %v303_v21 = vshrl.u32 %v298_v53, 16 }
  0x44   :  { %v168_v25 = vsub.s32 %v164_v54, %v167_v16  ;;  %v289_v30 = vadd.s32 %v287_v23, %v285_v17  ;;  %v309_v13 = vsel %vm308_vm3, 1, %v1458_v58  ;;  %v376_v29 = vand.u32 2147483647, %v1493_v8 }
  0x45   :  { %v311_v28 = vadd.s32 %v309_v13, %v307_v19  ;;  %v1640_v37 = vadd.s32 %v306_v22, %v302_v4  ;;  %v260_v39 = vsel %vm254_vm12, %v257_v56, %v259_v1  ;;  %v391_v43 = vsub.s32 32, %v390_v20 }
  0x46   :  { %vm169_vm4 = vcmp.lt.s32.totalorder %v168_v25, 0  ;;  %v170_v33 = vsub.s32 0, %v168_v25  ;;  %v290_v35 = vadd.s32 %v289_v30, %v279_v45  ;;  %vm68_vm5 = vcmp.lt.s32.totalorder %v1487_v6, 0 }
  0x47   :  { %v312_v41 = vadd.s32 %v311_v28, %v301_v18  ;;  %v160_v48 = vadd.s32 %v1586_v14, %v1600_v24  ;;  %v383_v52 = vand.u32 8388607, %v376_v29  ;;  %v190_v53 = vsub.s32 4, %v1632_v10 }
  0x48   :  { %v171_v46 = vsel %vm169_vm4, %v170_v33, %v168_v25  ;;  %v1645_v47 = vadd.s32 %v290_v35, %v281_v27  ;;  %v314_v62 = vmul.u32 %v1510_v32, %v260_v39  ;;  %v1655_v54 = vshrl.u32 %v388_v61, 5 }
  0x49   :  { %v172_v26 = vclz %v171_v46  ;;  %v313_v50 = vadd.s32 %v312_v41, %v303_v21  ;;  %vm1659_vm7 = vcmp.le.f32.partialorder %v66_v9, 0.7853982  ;;  %v402_v57 = vshll.u32 %v1455_v40, %v390_v20 }
  0x4a   :  { %vm316_vm6 = vc.u32 %v1645_v47, %v1640_v37  ;;  %v403_v59 = vshrl.u32 %v1456_v42, %v391_v43  ;;  %v393_v44 = vshll.u32 %v1452_v34, %v390_v20  ;;  %v394_v32 = vshrl.u32 %v1453_v36, %v391_v43 }
  0x4b   :  { %v1335_v14 = vadd.s32 4294967294, %v172_v26  ;;  %v317_v24 = vadd.s32 1, %v313_v50  ;;  %v396_v60 = vshll.u32 %v1453_v36, %v390_v20  ;;  %v397_v61 = vshrl.u32 %v1454_v38, %v391_v43 }
  0x4c   :  { %v399_v9 = vshll.u32 %v1454_v38, %v390_v20  ;;  %v400_v56 = vshrl.u32 %v1455_v40, %v391_v43  ;;  %v405_v1 = vshll.u32 %v1456_v42, %v390_v20  ;;  %v406_v2 = vshrl.u32 %v1457_v51, %v391_v43 }
  0x4d   :  { %vm1336_vm8 = vcmp.lt.s32.totalorder %v1335_v14, 0  ;;  %v318_v49 = vsel %vm316_vm6, %v317_v24, %v313_v50  ;;  %v404_v45 = vor.u32 %v403_v59, %v402_v57  ;;  %v191_v15 = vsel %vm68_vm5, %v190_v53, %v1632_v10  ;;  %v47_v50 = vld [vmem:[#allocation2 + $0x18] sm:$0xff] }
  0x4e   :  { %v175_v63 = vsel %vm1336_vm8, 0, %v1335_v14  ;;  %v319_v0 = vadd.s32 %v318_v49, %v314_v62  ;;  %v395_v22 = vor.u32 %v394_v32, %v393_v44  ;;  %v398_v16 = vor.u32 %v397_v61, %v396_v60 }
  0x4f   :  { %v176_v3 = vsub.s32 32, %v175_v63  ;;  %v177_v4 = vshll.u32 %v168_v25, %v175_v63  ;;  %v180_v12 = vsub.s32 4294967266, %v175_v63  ;;  %v401_v23 = vor.u32 %v400_v56, %v399_v9 }
  0x50   :  { %v320_v31 = vadd.s32 536870912, %v319_v0  ;;  %vm408_vm9 = vcmp.lt.s32.totalorder %v1655_v54, 1  ;;  %v407_v20 = vor.u32 %v406_v2, %v405_v1  ;;  %vm410_vm10 = vcmp.lt.s32.totalorder %v1655_v54, 3 }
  0x51   :  { %v178_v17 = vshrl.u32 %v160_v48, %v176_v3  ;;  %v181_v18 = vadd.s32 127, %v180_v12  ;;  %vm411_vm11 = vcmp.lt.s32.totalorder %v1655_v54, 4  ;;  %v384_v30 = vor.u32 8388608, %v383_v52 }
  0x52   :  { %v1677_v19 = vshrl.u32 %v320_v31, 30  ;;  %v417_v10 = vsel %vm411_vm11, %v404_v45, 920167782  ;;  %v193_v13 = vsel %vm1659_vm7, 0, %v191_v15  ;;  %vm409_vm12 = vcmp.lt.s32.totalorder %v1655_v54, 2 }
  0x53   :  { %v179_v25 = vor.u32 %v178_v17, %v177_v4  ;;  %v182_v27 = vshll.u32 %v181_v18, 23  ;;  %v416_v35 = vsel %vm408_vm9, %v395_v22, %v398_v16  ;;  %v418_v39 = vsel %vm410_vm10, %v401_v23, %v417_v10 }
  0x54   :  { %v322_v21 = vshll.u32 %v1677_v19, 30  ;;  %v392_v46 = vshrl.u32 %v1452_v34, %v391_v43  ;;  %v420_v48 = vsel %vm408_vm9, %v398_v16, %v401_v23  ;;  %v421_v26 = vsel %vm411_vm11, %v407_v20, 1326507024 }
  0x55   :  { %v183_v28 = vor.u32 4788187, %v182_v27  ;;  %v186_v33 = vcvt.s32.f32 %v179_v25  ;;  %v210_v53 = vadd.s32 3, %v193_v13  ;;  %v422_v62 = vsel %vm410_vm10, %v404_v45, %v421_v26  ;;  %v48_v27 = vld [vmem:[#allocation2 + $0x20] sm:$0xff] }
  0x56   :  { %v1691_v41 = vsub.s32 %v319_v0, %v322_v21  ;;  %v1700_v14 = vshll.u32 %v384_v30, 8  ;;  %v419_v43 = vsel %vm409_vm12, %v416_v35, %v418_v39  ;;  %v423_v57 = vsel %vm409_vm12, %v420_v48, %v422_v62 }
  0x57   :  { %v184_v52 = vand.u32 2147483647, %v183_v28  ;;  %v427_v60 = vand.u32 65535, %v423_v57  ;;  %v1711_v61 = vadd.f32 %v1484_v5, %v47_v50  ;;  %v315_v49 = vadd.s32 %v1640_v37, %v1645_v47 }
  0x58   :  { %vm324_vm13 = vcmp.lt.s32.totalorder %v1691_v41, 0  ;;  %v325_v24 = vsub.s32 0, %v1691_v41  ;;  %v425_v44 = vand.u32 65535, %v1700_v14  ;;  %v426_v32 = vshrl.u32 %v1700_v14, 16 }
  0x59   :  { %v187_v59 = vmul.f32 %v186_v33, %v184_v52  ;;  %v428_v56 = vshrl.u32 %v423_v57, 16  ;;  %v1716_v0 = vand.u32 3, %v210_v53  ;;  %vm223_vm14 = vcmp.lt.s32.totalorder %v1490_v7, 0 }
  0x5a   :  { %v326_v9 = vsel %vm324_vm13, %v325_v24, %v1691_v41  ;;  %v1719_v2 = vmul.u32 %v427_v60, %v426_v32  ;;  %v413_v3 = vsel %vm411_vm11, %v401_v23, 2102212464  ;;  %v429_v4 = vmul.u32 %v427_v60, %v425_v44 }
  0x5b   :  { %v188_v63 = vxor.u32 2147483648, %v187_v59  ;;  %v327_v1 = vclz %v326_v9  ;;  %v430_v12 = vmul.u32 %v428_v56, %v425_v44  ;;  %v450_v45 = vshrl.u32 %v419_v43, 16 }
  0x5c   :  { %v345_v15 = vsub.s32 4, %v1677_v19  ;;  %v412_v31 = vsel %vm408_vm9, %v392_v46, %v395_v22  ;;  %v435_v23 = vshll.u32 %v1719_v2, 16  ;;  %v449_v20 = vand.u32 65535, %v419_v43 }
  0x5d   :  { %v189_v37 = vsel %vm68_vm5, %v188_v63, %v187_v59  ;;  %v1338_v47 = vadd.s32 4294967294, %v327_v1  ;;  %v433_v18 = vshll.u32 %v430_v12, 16  ;;  %vm1738_vm15 = vcmp.le.f32.partialorder %v221_v11, 0.7853982 }
  0x5e   :  { %v1731_v17 = vsel %vm1659_vm7, %v1487_v6, %v189_v37  ;;  %v414_v22 = vsel %vm410_vm10, %v398_v16, %v413_v3  ;;  %v432_v55 = vmul.u32 %v428_v56, %v426_v32  ;;  %v1744_v13 = vmul.u32 %v450_v45, %v425_v44 }
  0x5f   :  { %v194_v25 = vmul.f32 %v1731_v17, %v1731_v17  ;;  %vm1339_vm0 = vcmp.lt.s32.totalorder %v1338_v47, 0  ;;  %vm437_vm1 = vc.u32 %v429_v4, %v433_v18  ;;  %v439_v10 = vadd.s32 %v433_v18, %v429_v4 }
  0x60   :  { %v330_v30 = vsel %vm1339_vm0, 0, %v1338_v47  ;;  %v438_v11 = vsel %vm437_vm1, 1, %v1458_v58  ;;  %v453_v46 = vmul.u32 %v449_v20, %v426_v32  ;;  %vm216_vm3 = vcmp.eq.s32.totalorder %v1716_v0, 2 }
  0x61   :  { %v195_v21 = vmul.f32 -0.001358992, %v194_v25  ;;  %v202_v28 = vmul.f32 -0.00019511016, %v194_v25  ;;  %v331_v33 = vsub.s32 32, %v330_v30  ;;  %v332_v35 = vshll.u32 %v1691_v41, %v330_v30 }
  0x62   :  { %v335_v39 = vsub.s32 4294967266, %v330_v30  ;;  %vm441_vm2 = vc.u32 %v439_v10, %v435_v23  ;;  %v440_v16 = vadd.s32 %v438_v11, %v432_v55  ;;  %v346_v53 = vsel %vm223_vm14, %v345_v15, %v1677_v19 }
  0x63   :  { %v196_v48 = vadd.f32 0.041655596, %v195_v21  ;;  %v203_v26 = vadd.f32 0.008332121, %v202_v28  ;;  %v333_v50 = vshrl.u32 %v315_v49, %v331_v33  ;;  %v434_v62 = vshrl.u32 %v430_v12, 16 }
  0x64   :  { %v336_v52 = vadd.s32 127, %v335_v39  ;;  %v451_v24 = vmul.u32 %v449_v20, %v425_v44  ;;  %v442_v59 = vsel %vm441_vm2, 1, %v1458_v58  ;;  %vm213_vm4 = vcmp.eq.s32.totalorder %v1716_v0, 0 }
  0x65   :  { %v197_v43 = vmul.f32 %v196_v48, %v194_v25  ;;  %v204_v41 = vmul.f32 %v203_v26, %v194_v25  ;;  %v334_v57 = vor.u32 %v333_v50, %v332_v35  ;;  %v444_v9 = vadd.s32 %v442_v59, %v440_v16 }
  0x66   :  { %v337_v60 = vshll.u32 %v336_v52, 23  ;;  %v454_v49 = vmul.u32 %v450_v45, %v426_v32  ;;  %v455_v56 = vshll.u32 %v1744_v13, 16  ;;  %vm212_vm5 = vcmp.lt.s32.totalorder %v1716_v0, 2 }
  0x67   :  { %v198_v63 = vadd.f32 -0.4999988, %v197_v43  ;;  %v205_v1 = vadd.f32 -0.16666654, %v204_v41  ;;  %v415_v19 = vsel %vm409_vm12, %v412_v31, %v414_v22  ;;  %v457_v44 = vshll.u32 %v453_v46, 16 }
  0x68   :  { %v338_v3 = vor.u32 4788187, %v337_v60  ;;  %v341_v4 = vcvt.s32.f32 %v334_v57  ;;  %v348_v12 = vsel %vm1738_vm15, 0, %v346_v53  ;;  %vm459_vm6 = vc.u32 %v451_v24, %v455_v56 }
  0x69   :  { %v199_v37 = vmul.f32 %v198_v63, %v194_v25  ;;  %v206_v47 = vmul.f32 %v205_v1, %v194_v25  ;;  %v460_v32 = vsel %vm459_vm6, 1, %v1458_v58  ;;  %v461_v45 = vadd.s32 %v455_v56, %v451_v24 }
  0x6a   :  { %v339_v15 = vand.u32 2147483647, %v338_v3  ;;  %v436_v18 = vshrl.u32 %v1719_v2, 16  ;;  %v445_v23 = vadd.s32 %v444_v9, %v434_v62  ;;  %v462_v20 = vadd.s32 %v460_v32, %v454_v49 }
  0x6b   :  { %v200_v55 = vadd.f32 1.0, %v199_v37  ;;  %v207_v54 = vadd.f32 1.0, %v206_v47  ;;  %v456_v31 = vshrl.u32 %v1744_v13, 16  ;;  %vm463_vm7 = vc.u32 %v461_v45, %v457_v44 }
  0x6c   :  { %v342_v22 = vmul.f32 %v341_v4, %v339_v15  ;;  %v365_v30 = vadd.s32 3, %v348_v12  ;;  %v464_v10 = vsel %vm463_vm7, 1, %v1458_v58  ;;  %v534_v21 = vand.u32 2139095040, %v1711_v61 }
  0x6d   :  { %v208_v25 = vmul.f32 %v207_v54, %v1731_v17  ;;  %v217_v28 = vxor.u32 2147483648, %v200_v55  ;;  %v458_v33 = vshrl.u32 %v453_v46, 16  ;;  %v466_v35 = vadd.s32 %v464_v10, %v462_v20 }
  0x6e   :  { %v343_v39 = vxor.u32 2147483648, %v342_v22  ;;  %v1766_v2 = vadd.s32 %v445_v23, %v436_v18  ;;  %v1768_v11 = vadd.s32 %v461_v45, %v457_v44  ;;  %v535_v48 = vshrl.u32 %v534_v21, 23 }
  0x6f   :  { %v214_v26 = vxor.u32 2147483648, %v208_v25  ;;  %v218_v13 = vsel %vm216_vm3, %v217_v28, %v208_v25  ;;  %v467_v50 = vadd.s32 %v466_v35, %v456_v31  ;;  %v531_v16 = vand.u32 2147483647, %v1711_v61 }
  0x70   :  { %vm209_vm8 = vweird.f32 %v1487_v6  ;;  %v344_v17 = vsel %vm223_vm14, %v343_v39, %v342_v22  ;;  %v1343_v46 = vadd.s32 4294967169, %v535_v48  ;;  %v469_v24 = vmul.u32 %v1700_v14, %v415_v19 }
  0x71   :  { %v215_v52 = vsel %vm213_vm4, %v200_v55, %v214_v26  ;;  %v347_v53 = vsel %vm1738_vm15, %v1490_v7, %v344_v17  ;;  %v468_v62 = vadd.s32 %v467_v50, %v458_v33  ;;  %vm471_vm9 = vc.u32 %v1766_v2, %v1768_v11 }
  0x72   :  { %v219_v43 = vsel %vm212_vm5, %v215_v52, %v218_v13  ;;  %v349_v41 = vmul.f32 %v347_v53, %v347_v53  ;;  %v541_v6 = vadd.s32 1, %v1343_v46  ;;  %v1786_v59 = vand.u32 3, %v365_v30 }
  0x73   :  { %v220_v57 = vsel %vm209_vm8, nan, %v219_v43  ;;  %v472_v60 = vadd.s32 1, %v468_v62  ;;  %v538_v9 = vand.u32 8388607, %v531_v16  ;;  %v1791_v44 = vadd.f32 %v1484_v5, %v48_v27 }
  0x74   :  { %v350_v49 = vmul.f32 -0.001358992, %v349_v41  ;;  %v357_v56 = vmul.f32 -0.00019511016, %v349_v41  ;;  %vm542_vm10 = vcmp.gt.s32.totalorder %v541_v6, 0  ;;  %1306 = vst [vmem:[#allocation7] sm:$0xff] %v220_v57  ;;  %vm364_vm14 = vweird.f32 %v1490_v7 }
  0x75   :  { %v473_v14 = vsel %vm471_vm9, %v472_v60, %v468_v62  ;;  %v543_v63 = vsel %vm542_vm10, %v541_v6, 0  ;;  %vm371_vm11 = vcmp.eq.s32.totalorder %v1786_v59, 2  ;;  %v539_v47 = vor.u32 8388608, %v538_v9 }
  0x76   :  { %v351_v0 = vadd.f32 0.041655596, %v350_v49  ;;  %v358_v1 = vadd.f32 0.008332121, %v357_v56  ;;  %v474_v19 = vadd.s32 %v473_v14, %v469_v24  ;;  %v545_v3 = vand.u32 31, %v543_v63 }
  0x77   :  { %vm368_vm12 = vcmp.eq.s32.totalorder %v1786_v59, 0  ;;  %v1795_v32 = vshrl.u32 %v543_v63, 5  ;;  %vm367_vm13 = vcmp.lt.s32.totalorder %v1786_v59, 2  ;;  %v686_v33 = vand.u32 2147483647, %v1791_v44 }
  0x78   :  { %v352_v4 = vmul.f32 %v351_v0, %v349_v41  ;;  %v359_v12 = vmul.f32 %v358_v1, %v349_v41  ;;  %v475_v37 = vadd.s32 536870912, %v474_v19  ;;  %v1797_v45 = vsub.s32 32, %v545_v3 }
  0x79   :  { %v548_v15 = vshll.u32 %v1452_v34, %v545_v3  ;;  %v551_v18 = vshll.u32 %v1453_v36, %v545_v3  ;;  %v554_v54 = vshll.u32 %v1454_v38, %v545_v3  ;;  %v557_v10 = vshll.u32 %v1455_v40, %v545_v3 }
  0x7a   :  { %v353_v23 = vadd.f32 -0.4999988, %v352_v4  ;;  %v360_v20 = vadd.f32 -0.16666654, %v359_v12  ;;  %v1802_v55 = vshrl.u32 %v475_v37, 30  ;;  %v549_v31 = vshrl.u32 %v1453_v36, %v1797_v45 }
  0x7b   :  { %v552_v22 = vshrl.u32 %v1454_v38, %v1797_v45  ;;  %v555_v30 = vshrl.u32 %v1455_v40, %v1797_v45  ;;  %v558_v39 = vshrl.u32 %v1456_v42, %v1797_v45  ;;  %vm563_vm15 = vcmp.lt.s32.totalorder %v1795_v32, 1 }
  0x7c   :  { %v354_v21 = vmul.f32 %v353_v23, %v349_v41  ;;  %v361_v25 = vmul.f32 %v360_v20, %v349_v41  ;;  %v477_v28 = vshll.u32 %v1802_v55, 30  ;;  %v1815_v35 = vor.u32 %v549_v31, %v548_v15 }
  0x7d   :  { %v689_v48 = vand.u32 2139095040, %v1791_v44  ;;  %v1821_v17 = vor.u32 %v552_v22, %v551_v18  ;;  %v556_v46 = vor.u32 %v555_v30, %v554_v54  ;;  %v559_v52 = vor.u32 %v558_v39, %v557_v10 }
  0x7e   :  { %v355_v26 = vadd.f32 1.0, %v354_v21  ;;  %v362_v13 = vadd.f32 1.0, %v361_v25  ;;  %v478_v50 = vsub.s32 %v474_v19, %v477_v28  ;;  %v560_v62 = vshll.u32 %v1456_v42, %v545_v3 }
  0x7f   :  { %v561_v24 = vshrl.u32 %v1457_v51, %v1797_v45  ;;  %vm565_vm1 = vcmp.lt.s32.totalorder %v1795_v32, 3  ;;  %vm566_vm2 = vcmp.lt.s32.totalorder %v1795_v32, 4  ;;  %v1828_v57 = vshll.u32 %v539_v47, 8 }
  0x80   :  { %v363_v43 = vmul.f32 %v362_v13, %v347_v53  ;;  %v372_v41 = vxor.u32 2147483648, %v355_v26  ;;  %vm479_vm0 = vcmp.lt.s32.totalorder %v478_v50, 0  ;;  %v480_v6 = vsub.s32 0, %v478_v50 }
  0x81   :  { %v690_v60 = vshrl.u32 %v689_v48, 23  ;;  %v562_v56 = vor.u32 %v561_v24, %v560_v62  ;;  %vm564_vm3 = vcmp.lt.s32.totalorder %v1795_v32, 2  ;;  %v571_v53 = vsel %vm563_vm15, %v1815_v35, %v1821_v17 }
  0x82   :  { %v369_v9 = vxor.u32 2147483648, %v363_v43  ;;  %v373_v27 = vsel %vm371_vm11, %v372_v41, %v363_v43  ;;  %v481_v49 = vsel %vm479_vm0, %v480_v6, %v478_v50  ;;  %v572_v63 = vsel %vm566_vm2, %v559_v52, 920167782 }
  0x83   :  { %v482_v14 = vclz %v481_v49  ;;  %vm378_vm4 = vcmp.lt.s32.totalorder %v1493_v8, 0  ;;  %v470_v1 = vadd.s32 %v1768_v11, %v1766_v2  ;;  %v573_v19 = vsel %vm565_vm1, %v556_v46, %v572_v63 }
  0x84   :  { %v370_v0 = vsel %vm368_vm12, %v355_v26, %v369_v9  ;;  %vm1850_vm5 = vcmp.le.f32.partialorder %v376_v29, 0.7853982  ;;  %v1346_v37 = vadd.s32 4294967169, %v690_v60  ;;  %v1856_v47 = vand.u32 8388607, %v686_v33 }
  0x85   :  { %v374_v3 = vsel %vm367_vm13, %v370_v0, %v373_v27  ;;  %v1341_v12 = vadd.s32 4294967294, %v482_v14  ;;  %v500_v11 = vsub.s32 4, %v1802_v55  ;;  %v574_v59 = vsel %vm564_vm3, %v571_v53, %v573_v19 }
  0x86   :  { %v375_v2 = vsel %vm364_vm14, nan, %v374_v3  ;;  %v575_v29 = vsel %vm563_vm15, %v1821_v17, %v556_v46  ;;  %v576_v15 = vsel %vm566_vm2, %v562_v56, 1326507024  ;;  %v580_v18 = vand.u32 65535, %v1828_v57 }
  0x87   :  { %vm1342_vm6 = vcmp.lt.s32.totalorder %v1341_v12, 0  ;;  %v581_v23 = vshrl.u32 %v1828_v57, 16  ;;  %1307 = vst [vmem:[#allocation7 + $0x8] sm:$0xff] %v375_v2  ;;  %v577_v20 = vsel %vm565_vm1, %v559_v52, %v576_v15  ;;  %v604_v54 = vand.u32 65535, %v574_v59 }
  0x88   :  { %v485_v7 = vsel %vm1342_vm6, 0, %v1341_v12  ;;  %v605_v31 = vshrl.u32 %v574_v59, 16  ;;  %v578_v21 = vsel %vm564_vm3, %v575_v29, %v577_v20  ;;  %v501_v25 = vsel %vm378_vm4, %v500_v11, %v1802_v55 }
  0x89   :  { %v486_v22 = vsub.s32 32, %v485_v7  ;;  %v487_v30 = vshll.u32 %v478_v50, %v485_v7  ;;  %v490_v10 = vsub.s32 4294967266, %v485_v7  ;;  %v547_v28 = vshrl.u32 %v1452_v34, %v1797_v45 }
  0x8a   :  { %v582_v39 = vand.u32 65535, %v578_v21  ;;  %v696_v48 = vadd.s32 1, %v1346_v37  ;;  %v568_v52 = vsel %vm566_vm2, %v556_v46, 2102212464  ;;  %v583_v62 = vshrl.u32 %v578_v21, 16 }
  0x8b   :  { %v488_v26 = vshrl.u32 %v470_v1, %v486_v22  ;;  %v491_v13 = vadd.s32 127, %v490_v10  ;;  %v606_v24 = vmul.u32 %v604_v54, %v580_v18  ;;  %v607_v43 = vmul.u32 %v605_v31, %v580_v18 }
  0x8c   :  { %v586_v50 = vmul.u32 %v582_v39, %v581_v23  ;;  %v608_v41 = vmul.u32 %v604_v54, %v581_v23  ;;  %v584_v9 = vmul.u32 %v582_v39, %v580_v18  ;;  %v585_v27 = vmul.u32 %v583_v62, %v580_v18 }
  0x8d   :  { %v489_v6 = vor.u32 %v488_v26, %v487_v30  ;;  %v492_v60 = vshll.u32 %v491_v13, 23  ;;  %v503_v55 = vsel %vm1850_vm5, 0, %v501_v25  ;;  %v587_v45 = vmul.u32 %v583_v62, %v581_v23 }
  0x8e   :  { %v609_v49 = vmul.u32 %v605_v31, %v581_v23  ;;  %v610_v56 = vshll.u32 %v607_v43, 16  ;;  %v588_v63 = vshll.u32 %v585_v27, 16  ;;  %v590_v0 = vshll.u32 %v586_v50, 16 }
  0x8f   :  { %v493_v14 = vor.u32 4788187, %v492_v60  ;;  %v496_v53 = vcvt.s32.f32 %v489_v6  ;;  %v567_v46 = vsel %vm563_vm15, %v547_v28, %v1815_v35  ;;  %v569_v1 = vsel %vm565_vm1, %v1821_v17, %v568_v52 }
  0x90   :  { %v612_v19 = vshll.u32 %v608_v41, 16  ;;  %vm614_vm7 = vc.u32 %v606_v24, %v610_v56  ;;  %vm592_vm8 = vc.u32 %v584_v9, %v588_v63  ;;  %v594_v12 = vadd.s32 %v588_v63, %v584_v9 }
  0x91   :  { %v494_v3 = vand.u32 2147483647, %v493_v14  ;;  %v615_v37 = vsel %vm614_vm7, 1, %v1458_v58  ;;  %v589_v2 = vshrl.u32 %v585_v27, 16  ;;  %v593_v11 = vsel %vm592_vm8, 1, %v1458_v58 }
  0x92   :  { %v616_v59 = vadd.s32 %v610_v56, %v606_v24  ;;  %v617_v29 = vadd.s32 %v615_v37, %v609_v49  ;;  %v595_v18 = vadd.s32 %v593_v11, %v587_v45  ;;  %vm596_vm9 = vc.u32 %v594_v12, %v590_v0 }
  0x93   :  { %v497_v15 = vmul.f32 %v496_v53, %v494_v3  ;;  %vm697_vm10 = vcmp.gt.s32.totalorder %v696_v48, 0  ;;  %v597_v35 = vsel %vm596_vm9, 1, %v1458_v58  ;;  %v611_v23 = vshrl.u32 %v607_v43, 16 }
  0x94   :  { %vm618_vm11 = vc.u32 %v616_v59, %v612_v19  ;;  %v698_v17 = vsel %vm697_vm10, %v696_v48, 0  ;;  %v591_v20 = vshrl.u32 %v586_v50, 16  ;;  %v599_v54 = vadd.s32 %v597_v35, %v595_v18 }
  0x95   :  { %v498_v7 = vxor.u32 2147483648, %v497_v15  ;;  %v619_v31 = vsel %vm618_vm11, 1, %v1458_v58  ;;  %v570_v22 = vsel %vm564_vm3, %v567_v46, %v569_v1  ;;  %v613_v30 = vshrl.u32 %v608_v41, 16 }
  0x96   :  { %v621_v10 = vadd.s32 %v619_v31, %v617_v29  ;;  %v700_v21 = vand.u32 31, %v698_v17  ;;  %v600_v28 = vadd.s32 %v599_v54, %v589_v2  ;;  %v1897_v39 = vadd.s32 %v616_v59, %v612_v19  ;;  %v49_v2 = vld [vmem:[#allocation2 + $0x28] sm:$0xff] }
  0x97   :  { %v499_v25 = vsel %vm378_vm4, %v498_v7, %v497_v15  ;;  %v694_v26 = vor.u32 8388608, %v1856_v47  ;;  %v1903_v52 = vshrl.u32 %v698_v17, 5  ;;  %v520_v50 = vadd.s32 3, %v503_v55 }
  0x98   :  { %v502_v48 = vsel %vm1850_vm5, %v1493_v8, %v499_v25  ;;  %v622_v13 = vadd.s32 %v621_v10, %v611_v23  ;;  %v1905_v32 = vsub.s32 32, %v700_v21  ;;  %v1907_v24 = vadd.s32 %v600_v28, %v591_v20 }
  0x99   :  { %v504_v62 = vmul.f32 %v502_v48, %v502_v48  ;;  %v624_v43 = vmul.u32 %v1828_v57, %v570_v22  ;;  %v703_v6 = vshll.u32 %v1452_v34, %v700_v21  ;;  %v706_v4 = vshll.u32 %v1453_v36, %v700_v21 }
  0x9a   :  { %v623_v41 = vadd.s32 %v622_v13, %v613_v30  ;;  %v704_v47 = vshrl.u32 %v1453_v36, %v1905_v32  ;;  %vm626_vm12 = vc.u32 %v1907_v24, %v1897_v39  ;;  %v707_v27 = vshrl.u32 %v1454_v38, %v1905_v32 }
  0x9b   :  { %v505_v60 = vmul.f32 -0.001358992, %v504_v62  ;;  %v512_v9 = vmul.f32 -0.00019511016, %v504_v62  ;;  %v709_v45 = vshll.u32 %v1454_v38, %v700_v21  ;;  %v710_v57 = vshrl.u32 %v1455_v40, %v1905_v32 }
  0x9c   :  { %v627_v55 = vadd.s32 1, %v623_v41  ;;  %vm718_vm13 = vcmp.lt.s32.totalorder %v1903_v52, 1  ;;  %v712_v14 = vshll.u32 %v1455_v40, %v700_v21  ;;  %v713_v53 = vshrl.u32 %v1456_v42, %v1905_v32 }
  0x9d   :  { %v506_v49 = vadd.f32 0.041655596, %v505_v60  ;;  %v513_v56 = vadd.f32 0.008332121, %v512_v9  ;;  %v1925_v0 = vor.u32 %v704_v47, %v703_v6  ;;  %v715_v46 = vshll.u32 %v1456_v42, %v700_v21 }
  0x9e   :  { %v628_v63 = vsel %vm626_vm12, %v627_v55, %v623_v41  ;;  %v716_v1 = vshrl.u32 %v1457_v51, %v1905_v32  ;;  %v1930_v37 = vor.u32 %v707_v27, %v706_v4  ;;  %v1932_v11 = vor.u32 %v710_v57, %v709_v45 }
  0x9f   :  { %v507_v19 = vmul.f32 %v506_v49, %v504_v62  ;;  %v514_v3 = vmul.f32 %v513_v56, %v504_v62  ;;  %v629_v12 = vadd.s32 %v628_v63, %v624_v43  ;;  %v714_v59 = vor.u32 %v713_v53, %v712_v14 }
  0xa0   :  { %v717_v29 = vor.u32 %v716_v1, %v715_v46  ;;  %vm720_vm14 = vcmp.lt.s32.totalorder %v1903_v52, 3  ;;  %vm721_vm15 = vcmp.lt.s32.totalorder %v1903_v52, 4  ;;  %v521_v23 = vand.u32 3, %v520_v50 }
  0xa1   :  { %v508_v15 = vadd.f32 -0.4999988, %v507_v19  ;;  %v515_v18 = vadd.f32 -0.16666654, %v514_v3  ;;  %v630_v35 = vadd.s32 536870912, %v629_v12  ;;  %vm719_vm0 = vcmp.lt.s32.totalorder %v1903_v52, 2 }
  0xa2   :  { %v727_v17 = vsel %vm721_vm15, %v714_v59, 920167782  ;;  %v1939_v7 = vshll.u32 %v694_v26, 8  ;;  %v726_v22 = vsel %vm718_vm13, %v1925_v0, %v1930_v37  ;;  %v1948_v30 = vadd.f32 %v1484_v5, %v49_v2 }
  0xa3   :  { %v509_v20 = vmul.f32 %v508_v15, %v504_v62  ;;  %v516_v54 = vmul.f32 %v515_v18, %v504_v62  ;;  %v1941_v31 = vshrl.u32 %v630_v35, 30  ;;  %v728_v10 = vsel %vm720_vm14, %v1932_v11, %v727_v17 }
  0xa4   :  { %v731_v21 = vsel %vm721_vm15, %v717_v29, 1326507024  ;;  %v730_v13 = vsel %vm718_vm13, %v1930_v37, %v1932_v11  ;;  %vm522_vm1 = vcmp.lt.s32.totalorder %v521_v23, 2  ;;  %vm526_vm2 = vcmp.eq.s32.totalorder %v521_v23, 2 }
  0xa5   :  { %v510_v25 = vadd.f32 1.0, %v509_v20  ;;  %v517_v28 = vadd.f32 1.0, %v516_v54  ;;  %v632_v26 = vshll.u32 %v1941_v31, 30  ;;  %v729_v62 = vsel %vm719_vm0, %v726_v22, %v728_v10 }
  0xa6   :  { %v732_v50 = vsel %vm720_vm14, %v714_v59, %v731_v21  ;;  %v735_v47 = vand.u32 65535, %v1939_v7  ;;  %vm523_vm3 = vcmp.eq.s32.totalorder %v521_v23, 0  ;;  %v736_v60 = vshrl.u32 %v1939_v7, 16 }
  0xa7   :  { %v518_v43 = vmul.f32 %v517_v28, %v502_v48  ;;  %v527_v41 = vxor.u32 2147483648, %v510_v25  ;;  %v633_v6 = vsub.s32 %v629_v12, %v632_v26  ;;  %v733_v4 = vsel %vm719_vm0, %v730_v13, %v732_v50 }
  0xa8   :  { %v760_v9 = vshrl.u32 %v729_v62, 16  ;;  %vm519_vm5 = vweird.f32 %v1493_v8  ;;  %v702_v48 = vshrl.u32 %v1452_v34, %v1905_v32  ;;  %v737_v57 = vand.u32 65535, %v733_v4 }
  0xa9   :  { %v524_v27 = vxor.u32 2147483648, %v518_v43  ;;  %v528_v55 = vsel %vm526_vm2, %v527_v41, %v518_v43  ;;  %vm634_vm4 = vcmp.lt.s32.totalorder %v633_v6, 0  ;;  %v635_v45 = vsub.s32 0, %v633_v6 }
  0xaa   :  { %v738_v49 = vshrl.u32 %v733_v4, 16  ;;  %v759_v53 = vand.u32 65535, %v729_v62  ;;  %v1971_v63 = vmul.u32 %v760_v9, %v735_v47  ;;  %v739_v19 = vmul.u32 %v737_v57, %v735_v47 }
  0xab   :  { %v525_v56 = vsel %vm523_vm3, %v510_v25, %v524_v27  ;;  %v636_v14 = vsel %vm634_vm4, %v635_v45, %v633_v6  ;;  %vm533_vm6 = vcmp.lt.s32.totalorder %v1711_v61, 0  ;;  %v625_v8 = vadd.s32 %v1897_v39, %v1907_v24 }
  0xac   :  { %v529_v46 = vsel %vm522_vm1, %v525_v56, %v528_v55  ;;  %v637_v1 = vclz %v636_v14  ;;  %v740_v3 = vmul.u32 %v738_v49, %v735_v47  ;;  %v741_v2 = vmul.u32 %v737_v57, %v736_v60 }
  0xad   :  { %v530_v12 = vsel %vm519_vm5, nan, %v529_v46  ;;  %v722_v59 = vsel %vm718_vm13, %v702_v48, %v1925_v0  ;;  %v742_v29 = vmul.u32 %v738_v49, %v736_v60  ;;  %v655_v18 = vsub.s32 4, %v1941_v31 }
  0xae   :  { %v1344_v32 = vadd.s32 4294967294, %v637_v1  ;;  %v743_v15 = vshll.u32 %v740_v3, 16  ;;  %1308 = vst [vmem:[#allocation7 + $0x10] sm:$0xff] %v530_v12  ;;  %v745_v35 = vshll.u32 %v741_v2, 16  ;;  %v761_v23 = vmul.u32 %v759_v53, %v735_v47 }
  0xaf   :  { %v763_v17 = vmul.u32 %v759_v53, %v736_v60  ;;  %vm1983_vm7 = vcmp.le.f32.partialorder %v531_v16, 0.7853982  ;;  %v765_v24 = vshll.u32 %v1971_v63, 16  ;;  %v723_v54 = vsel %vm721_vm15, %v1932_v11, 2102212464 }
  0xb0   :  { %vm1345_vm8 = vcmp.lt.s32.totalorder %v1344_v32, 0  ;;  %vm747_vm9 = vc.u32 %v739_v19, %v743_v15  ;;  %v749_v39 = vadd.s32 %v743_v15, %v739_v19  ;;  %v764_v10 = vmul.u32 %v760_v9, %v736_v60 }
  0xb1   :  { %v640_v0 = vsel %vm1345_vm8, 0, %v1344_v32  ;;  %v748_v22 = vsel %vm747_vm9, 1, %v1458_v58  ;;  %v656_v26 = vsel %vm533_vm6, %v655_v18, %v1941_v31  ;;  %v744_v13 = vshrl.u32 %v740_v3, 16  ;;  %v50_v32 = vld [vmem:[#allocation2 + $0x30] sm:$0xff] }
  0xb2   :  { %v641_v21 = vsub.s32 32, %v640_v0  ;;  %v642_v25 = vshll.u32 %v633_v6, %v640_v0  ;;  %v645_v28 = vsub.s32 4294967266, %v640_v0  ;;  %v750_v16 = vadd.s32 %v748_v22, %v742_v29 }
  0xb3   :  { %vm751_vm10 = vc.u32 %v749_v39, %v745_v35  ;;  %v767_v62 = vshll.u32 %v763_v17, 16  ;;  %vm769_vm11 = vc.u32 %v761_v23, %v765_v24  ;;  %v746_v11 = vshrl.u32 %v741_v2, 16 }
  0xb4   :  { %v643_v50 = vshrl.u32 %v625_v8, %v641_v21  ;;  %v646_v43 = vadd.s32 127, %v645_v28  ;;  %v752_v41 = vsel %vm751_vm10, 1, %v1458_v58  ;;  %v770_v4 = vsel %vm769_vm11, 1, %v1458_v58 }
  0xb5   :  { %v754_v47 = vadd.s32 %v752_v41, %v750_v16  ;;  %v771_v60 = vadd.s32 %v765_v24, %v761_v23  ;;  %v772_v27 = vadd.s32 %v770_v4, %v764_v10  ;;  %v844_v55 = vand.u32 2139095040, %v1948_v30 }
  0xb6   :  { %v644_v6 = vor.u32 %v643_v50, %v642_v25  ;;  %v647_v9 = vshll.u32 %v646_v43, 23  ;;  %v724_v31 = vsel %vm720_vm14, %v1930_v37, %v723_v54  ;;  %v766_v48 = vshrl.u32 %v1971_v63, 16 }
  0xb7   :  { %v755_v45 = vadd.s32 %v754_v47, %v744_v13  ;;  %vm773_vm12 = vc.u32 %v771_v60, %v767_v62  ;;  %v845_v14 = vshrl.u32 %v844_v55, 23  ;;  %v658_v53 = vsel %vm1983_vm7, 0, %v656_v26 }
  0xb8   :  { %v648_v57 = vor.u32 4788187, %v647_v9  ;;  %v651_v49 = vcvt.s32.f32 %v644_v6  ;;  %v774_v56 = vsel %vm773_vm12, 1, %v1458_v58  ;;  %v768_v46 = vshrl.u32 %v763_v17, 16 }
  0xb9   :  { %v776_v1 = vadd.s32 %v774_v56, %v772_v27  ;;  %v2005_v3 = vadd.s32 %v755_v45, %v746_v11  ;;  %v2007_v12 = vadd.s32 %v771_v60, %v767_v62  ;;  %v1349_v37 = vadd.s32 4294967169, %v845_v14 }
  0xba   :  { %v649_v19 = vand.u32 2147483647, %v648_v57  ;;  %v725_v63 = vsel %vm719_vm0, %v722_v59, %v724_v31  ;;  %v841_v2 = vand.u32 2147483647, %v1948_v30  ;;  %v675_v18 = vadd.s32 3, %v658_v53 }
  0xbb   :  { %v777_v8 = vadd.s32 %v776_v1, %v766_v48  ;;  %v851_v15 = vadd.s32 1, %v1349_v37  ;;  %v779_v17 = vmul.u32 %v1939_v7, %v725_v63  ;;  %vm781_vm13 = vc.u32 %v2005_v3, %v2007_v12 }
  0xbc   :  { %v652_v29 = vmul.f32 %v651_v49, %v649_v19  ;;  %v2016_v39 = vadd.f32 %v1484_v5, %v50_v32  ;;  %v848_v59 = vand.u32 8388607, %v841_v2  ;;  %v2029_v21 = vand.u32 3, %v675_v18 }
  0xbd   :  { %v778_v35 = vadd.s32 %v777_v8, %v768_v46  ;;  %vm852_vm14 = vcmp.gt.s32.totalorder %v851_v15, 0  ;;  %vm674_vm2 = vweird.f32 %v1711_v61  ;;  %vm2122_vm10 = vcmp.le.f32.partialorder %v686_v33, 0.7853982 }
  0xbe   :  { %v653_v23 = vxor.u32 2147483648, %v652_v29  ;;  %v853_v24 = vsel %vm852_vm14, %v851_v15, 0  ;;  %v849_v16 = vor.u32 8388608, %v848_v59  ;;  %v999_v62 = vand.u32 2139095040, %v2016_v39 }
  0xbf   :  { %v782_v52 = vadd.s32 1, %v778_v35  ;;  %v855_v54 = vand.u32 31, %v853_v24  ;;  %vm681_vm15 = vcmp.eq.s32.totalorder %v2029_v21, 2  ;;  %v2049_v31 = vshrl.u32 %v853_v24, 5 }
  0xc0   :  { %v654_v0 = vsel %vm533_vm6, %v653_v23, %v652_v29  ;;  %v2052_v48 = vshll.u32 %v849_v16, 8  ;;  %v996_v57 = vand.u32 2147483647, %v2016_v39  ;;  %v1000_v53 = vshrl.u32 %v999_v62, 23 }
  0xc1   :  { %v2025_v7 = vsel %vm1983_vm7, %v1711_v61, %v654_v0  ;;  %v783_v22 = vsel %vm781_vm13, %v782_v52, %v778_v35  ;;  %v2031_v28 = vsub.s32 32, %v855_v54  ;;  %v858_v26 = vshll.u32 %v1452_v34, %v855_v54 }
  0xc2   :  { %v659_v10 = vmul.f32 %v2025_v7, %v2025_v7  ;;  %v784_v25 = vadd.s32 %v783_v22, %v779_v17  ;;  %v861_v13 = vshll.u32 %v1453_v36, %v855_v54  ;;  %v864_v41 = vshll.u32 %v1454_v38, %v855_v54 }
  0xc3   :  { %v859_v11 = vshrl.u32 %v1453_v36, %v2031_v28  ;;  %v862_v47 = vshrl.u32 %v1454_v38, %v2031_v28  ;;  %v865_v4 = vshrl.u32 %v1455_v40, %v2031_v28  ;;  %v867_v60 = vshll.u32 %v1455_v40, %v855_v54 }
  0xc4   :  { %v660_v50 = vmul.f32 -0.001358992, %v659_v10  ;;  %v667_v20 = vmul.f32 -0.00019511016, %v659_v10  ;;  %v785_v43 = vadd.s32 536870912, %v784_v25  ;;  %v868_v55 = vshrl.u32 %v1456_v42, %v2031_v28 }
  0xc5   :  { %v870_v45 = vshll.u32 %v1456_v42, %v855_v54  ;;  %vm678_vm0 = vcmp.eq.s32.totalorder %v2029_v21, 0  ;;  %v2057_v46 = vor.u32 %v859_v11, %v858_v26  ;;  %v2059_v1 = vor.u32 %v862_v47, %v861_v13 }
  0xc6   :  { %v661_v6 = vadd.f32 0.041655596, %v660_v50  ;;  %v668_v9 = vadd.f32 0.008332121, %v667_v20  ;;  %v2044_v27 = vshrl.u32 %v785_v43, 30  ;;  %v869_v19 = vor.u32 %v868_v55, %v867_v60 }
  0xc7   :  { %v871_v37 = vshrl.u32 %v1457_v51, %v2031_v28  ;;  %vm677_vm1 = vcmp.lt.s32.totalorder %v2029_v21, 2  ;;  %v866_v29 = vor.u32 %v865_v4, %v864_v41  ;;  %vm873_vm3 = vcmp.lt.s32.totalorder %v2049_v31, 1 }
  0xc8   :  { %v662_v49 = vmul.f32 %v661_v6, %v659_v10  ;;  %v669_v56 = vmul.f32 %v668_v9, %v659_v10  ;;  %v787_v14 = vshll.u32 %v2044_v27, 30  ;;  %vm875_vm4 = vcmp.lt.s32.totalorder %v2049_v31, 3 }
  0xc9   :  { %v872_v15 = vor.u32 %v871_v37, %v870_v45  ;;  %vm876_vm5 = vcmp.lt.s32.totalorder %v2049_v31, 4  ;;  %vm688_vm7 = vcmp.lt.s32.totalorder %v1791_v44, 0  ;;  %v780_v17 = vadd.s32 %v2007_v12, %v2005_v3 }
  0xca   :  { %v663_v63 = vadd.f32 -0.4999988, %v662_v49  ;;  %v670_v8 = vadd.f32 -0.16666654, %v669_v56  ;;  %v2064_v32 = vsub.s32 %v784_v25, %v787_v14  ;;  %vm874_vm8 = vcmp.lt.s32.totalorder %v2049_v31, 2 }
  0xcb   :  { %v882_v52 = vsel %vm876_vm5, %v869_v19, 920167782  ;;  %v2080_v59 = vand.u32 8388607, %v996_v57  ;;  %v881_v22 = vsel %vm873_vm3, %v2057_v46, %v2059_v1  ;;  %v885_v12 = vsel %vm873_vm3, %v2059_v1, %v866_v29 }
  0xcc   :  { %v664_v18 = vmul.f32 %v663_v63, %v659_v10  ;;  %v671_v35 = vmul.f32 %v670_v8, %v659_v10  ;;  %vm789_vm6 = vcmp.lt.s32.totalorder %v2064_v32, 0  ;;  %v790_v23 = vsub.s32 0, %v2064_v32 }
  0xcd   :  { %v883_v3 = vsel %vm875_vm4, %v866_v29, %v882_v52  ;;  %v1352_v25 = vadd.s32 4294967169, %v1000_v53  ;;  %v886_v13 = vsel %vm876_vm5, %v872_v15, 1326507024  ;;  %v890_v62 = vand.u32 65535, %v2052_v48 }
  0xce   :  { %v665_v24 = vadd.f32 1.0, %v664_v18  ;;  %v672_v0 = vadd.f32 1.0, %v671_v35  ;;  %v791_v54 = vsel %vm789_vm6, %v790_v23, %v2064_v32  ;;  %v884_v20 = vsel %vm874_vm8, %v881_v22, %v883_v3 }
  0xcf   :  { %v792_v10 = vclz %v791_v54  ;;  %v887_v43 = vsel %vm875_vm4, %v869_v19, %v886_v13  ;;  %v891_v41 = vshrl.u32 %v2052_v48, 16  ;;  %v1006_v9 = vadd.s32 1, %v1352_v25 }
  0xd0   :  { %v673_v16 = vmul.f32 %v672_v0, %v2025_v7  ;;  %v682_v26 = vxor.u32 2147483648, %v665_v24  ;;  %v810_v7 = vsub.s32 4, %v2044_v27  ;;  %v888_v4 = vsel %vm874_vm8, %v885_v12, %v887_v43 }
  0xd1   :  { %v1347_v50 = vadd.s32 4294967294, %v792_v10  ;;  %v892_v60 = vand.u32 65535, %v888_v4  ;;  %v893_v6 = vshrl.u32 %v888_v4, 16  ;;  %v914_v49 = vand.u32 65535, %v884_v20 }
  0xd2   :  { %v679_v11 = vxor.u32 2147483648, %v673_v16  ;;  %v683_v47 = vsel %vm681_vm15, %v682_v26, %v673_v16  ;;  %v915_v56 = vshrl.u32 %v884_v20, 16  ;;  %v811_v8 = vsel %vm688_vm7, %v810_v7, %v2044_v27 }
  0xd3   :  { %vm1348_vm9 = vcmp.lt.s32.totalorder %v1347_v50, 0  ;;  %v857_v15 = vshrl.u32 %v1452_v34, %v2031_v28  ;;  %v878_v18 = vsel %vm876_vm5, %v866_v29, 2102212464  ;;  %v894_v61 = vmul.u32 %v892_v60, %v890_v62 }
  0xd4   :  { %v680_v55 = vsel %vm678_vm0, %v665_v24, %v679_v11  ;;  %v795_v45 = vsel %vm1348_vm9, 0, %v1347_v50  ;;  %v895_v23 = vmul.u32 %v893_v6, %v890_v62  ;;  %v896_v52 = vmul.u32 %v892_v60, %v891_v41 }
  0xd5   :  { %v684_v14 = vsel %vm677_vm1, %v680_v55, %v683_v47  ;;  %v796_v53 = vsub.s32 32, %v795_v45  ;;  %v797_v19 = vshll.u32 %v2064_v32, %v795_v45  ;;  %v800_v37 = vsub.s32 4294967266, %v795_v45 }
  0xd6   :  { %v685_v63 = vsel %vm674_vm2, nan, %v684_v14  ;;  %v916_v24 = vmul.u32 %v914_v49, %v890_v62  ;;  %v917_v27 = vmul.u32 %v915_v56, %v890_v62  ;;  %v918_v0 = vmul.u32 %v914_v49, %v891_v41 }
  0xd7   :  { %v798_v32 = vshrl.u32 %v780_v17, %v796_v53  ;;  %v801_v35 = vadd.s32 127, %v800_v37  ;;  %1309 = vst [vmem:[#allocation7 + $0x18] sm:$0xff] %v685_v63  ;;  %v897_v22 = vmul.u32 %v893_v6, %v891_v41  ;;  %v898_v10 = vshll.u32 %v895_v23, 16 }
  0xd8   :  { %v877_v33 = vsel %vm873_vm3, %v857_v15, %v2057_v46  ;;  %v900_v29 = vshll.u32 %v896_v52, 16  ;;  %v919_v3 = vmul.u32 %v915_v56, %v891_v41  ;;  %v920_v12 = vshll.u32 %v917_v27, 16 }
  0xd9   :  { %v799_v54 = vor.u32 %v798_v32, %v797_v19  ;;  %v802_v28 = vshll.u32 %v801_v35, 23  ;;  %vm902_vm11 = vc.u32 %v894_v61, %v898_v10  ;;  %v904_v16 = vadd.s32 %v898_v10, %v894_v61 }
  0xda   :  { %v879_v26 = vsel %vm875_vm4, %v2059_v1, %v878_v18  ;;  %v899_v13 = vshrl.u32 %v895_v23, 16  ;;  %v903_v62 = vsel %vm902_vm11, 1, %v1458_v58  ;;  %v922_v50 = vshll.u32 %v918_v0, 16 }
  0xdb   :  { %v803_v17 = vor.u32 4788187, %v802_v28  ;;  %v806_v25 = vcvt.s32.f32 %v799_v54  ;;  %v905_v43 = vadd.s32 %v903_v62, %v897_v22  ;;  %vm906_vm12 = vc.u32 %v904_v16, %v900_v29 }
  0xdc   :  { %vm924_vm13 = vc.u32 %v916_v24, %v920_v12  ;;  %v901_v46 = vshrl.u32 %v896_v52, 16  ;;  %v907_v41 = vsel %vm906_vm12, 1, %v1458_v58  ;;  %v926_v47 = vadd.s32 %v920_v12, %v916_v24 }
  0xdd   :  { %v804_v20 = vand.u32 2147483647, %v803_v17  ;;  %v925_v11 = vsel %vm924_vm13, 1, %v1458_v58  ;;  %v909_v4 = vadd.s32 %v907_v41, %v905_v43  ;;  %vm1007_vm14 = vcmp.gt.s32.totalorder %v1006_v9, 0 }
  0xde   :  { %v927_v60 = vadd.s32 %v925_v11, %v919_v3  ;;  %v813_v1 = vsel %vm2122_vm10, 0, %v811_v8  ;;  %v921_v6 = vshrl.u32 %v917_v27, 16  ;;  %vm928_vm15 = vc.u32 %v926_v47, %v922_v50 }
  0xdf   :  { %v807_v7 = vmul.f32 %v806_v25, %v804_v20  ;;  %v1008_v55 = vsel %vm1007_vm14, %v1006_v9, 0  ;;  %v880_v49 = vsel %vm874_vm8, %v877_v33, %v879_v26  ;;  %v910_v56 = vadd.s32 %v909_v4, %v899_v13 }
  0xe0   :  { %v929_v14 = vsel %vm928_vm15, 1, %v1458_v58  ;;  %v923_v53 = vshrl.u32 %v918_v0, 16  ;;  %v2140_v19 = vadd.s32 %v926_v47, %v922_v50  ;;  %v1010_v63 = vand.u32 31, %v1008_v55 }
  0xe1   :  { %v808_v45 = vxor.u32 2147483648, %v807_v7  ;;  %v931_v37 = vadd.s32 %v929_v14, %v927_v60  ;;  %v2144_v18 = vadd.s32 %v910_v56, %v901_v46  ;;  %v1004_v31 = vor.u32 8388608, %v2080_v59 }
  0xe2   :  { %v2150_v32 = vsub.s32 32, %v1010_v63  ;;  %v830_v61 = vadd.s32 3, %v813_v1  ;;  %v934_v23 = vmul.u32 %v2052_v48, %v880_v49  ;;  %v2153_v52 = vshrl.u32 %v1008_v55, 5 }
  0xe3   :  { %v809_v15 = vsel %vm688_vm7, %v808_v45, %v807_v7  ;;  %v932_v8 = vadd.s32 %v931_v37, %v921_v6  ;;  %vm936_vm0 = vc.u32 %v2144_v18, %v2140_v19  ;;  %v1013_v27 = vshll.u32 %v1452_v34, %v1010_v63 }
  0xe4   :  { %v812_v9 = vsel %vm2122_vm10, %v1791_v44, %v809_v15  ;;  %v1014_v21 = vshrl.u32 %v1453_v36, %v2150_v32  ;;  %v1016_v59 = vshll.u32 %v1453_v36, %v1010_v63  ;;  %v1017_v28 = vshrl.u32 %v1454_v38, %v2150_v32 }
  0xe5   :  { %v814_v35 = vmul.f32 %v812_v9, %v812_v9  ;;  %v933_v24 = vadd.s32 %v932_v8, %v923_v53  ;;  %v1019_v48 = vshll.u32 %v1454_v38, %v1010_v63  ;;  %v1020_v10 = vshrl.u32 %v1455_v40, %v2150_v32 }
  0xe6   :  { %v1022_v33 = vshll.u32 %v1455_v40, %v1010_v63  ;;  %v1023_v12 = vshrl.u32 %v1456_v42, %v2150_v32  ;;  %vm1028_vm1 = vcmp.lt.s32.totalorder %v2153_v52, 1  ;;  %v2170_v25 = vor.u32 %v1014_v21, %v1013_v27 }
  0xe7   :  { %v815_v0 = vmul.f32 -0.001358992, %v814_v35  ;;  %v822_v54 = vmul.f32 -0.00019511016, %v814_v35  ;;  %v937_v22 = vadd.s32 1, %v933_v24  ;;  %v1025_v16 = vshll.u32 %v1456_v42, %v1010_v63 }
  0xe8   :  { %v1026_v26 = vshrl.u32 %v1457_v51, %v2150_v32  ;;  %v2175_v20 = vor.u32 %v1017_v28, %v1016_v59  ;;  %v1021_v43 = vor.u32 %v1020_v10, %v1019_v48  ;;  %v1024_v46 = vor.u32 %v1023_v12, %v1022_v33 }
  0xe9   :  { %v816_v29 = vadd.f32 0.041655596, %v815_v0  ;;  %v823_v3 = vadd.f32 0.008332121, %v822_v54  ;;  %v938_v17 = vsel %vm936_vm0, %v937_v22, %v933_v24  ;;  %vm1031_vm2 = vcmp.lt.s32.totalorder %v2153_v52, 4  ;;  %v51_v22 = vld [vmem:[#allocation2 + $0x38] sm:$0xff] }
  0xea   :  { %v939_v50 = vadd.s32 %v938_v17, %v934_v23  ;;  %v1027_v41 = vor.u32 %v1026_v26, %v1025_v16  ;;  %vm1030_vm3 = vcmp.lt.s32.totalorder %v2153_v52, 3  ;;  %v831_v4 = vand.u32 3, %v830_v61 }
  0xeb   :  { %v817_v13 = vmul.f32 %v816_v29, %v814_v35  ;;  %v824_v62 = vmul.f32 %v823_v3, %v814_v35  ;;  %vm1029_vm4 = vcmp.lt.s32.totalorder %v2153_v52, 2  ;;  %v1037_v60 = vsel %vm1031_vm2, %v1024_v46, 920167782 }
  0xec   :  { %v940_v7 = vadd.s32 536870912, %v939_v50  ;;  %v2182_v1 = vshll.u32 %v1004_v31, 8  ;;  %v1036_v49 = vsel %vm1028_vm1, %v2170_v25, %v2175_v20  ;;  %v1038_v56 = vsel %vm1030_vm3, %v1021_v43, %v1037_v60 }
  0xed   :  { %v818_v11 = vadd.f32 -0.4999988, %v817_v13  ;;  %v825_v47 = vadd.f32 -0.16666654, %v824_v62  ;;  %v1041_v14 = vsel %vm1031_vm2, %v1027_v41, 1326507024  ;;  %v1040_v15 = vsel %vm1028_vm1, %v2175_v20, %v1021_v43 }
  0xee   :  { %v2184_v45 = vshrl.u32 %v940_v7, 30  ;;  %vm832_vm5 = vcmp.lt.s32.totalorder %v831_v4, 2  ;;  %vm836_vm6 = vcmp.eq.s32.totalorder %v831_v4, 2  ;;  %v1039_v8 = vsel %vm1029_vm4, %v1036_v49, %v1038_v56 }
  0xef   :  { %v819_v6 = vmul.f32 %v818_v11, %v814_v35  ;;  %v826_v55 = vmul.f32 %v825_v47, %v814_v35  ;;  %v1042_v31 = vsel %vm1030_vm3, %v1024_v46, %v1041_v14  ;;  %v1045_v24 = vand.u32 65535, %v2182_v1 }
  0xf0   :  { %v942_v63 = vshll.u32 %v2184_v45, 30  ;;  %vm833_vm7 = vcmp.eq.s32.totalorder %v831_v4, 0  ;;  %v1043_v27 = vsel %vm1029_vm4, %v1040_v15, %v1042_v31  ;;  %v1046_v21 = vshrl.u32 %v2182_v1, 16 }
  0xf1   :  { %v820_v53 = vadd.f32 1.0, %v819_v6  ;;  %v827_v37 = vadd.f32 1.0, %v826_v55  ;;  %v1070_v0 = vshrl.u32 %v1039_v8, 16  ;;  %vm829_vm9 = vweird.f32 %v1791_v44 }
  0xf2   :  { %v943_v23 = vsub.s32 %v939_v50, %v942_v63  ;;  %v1047_v48 = vand.u32 65535, %v1043_v27  ;;  %v1048_v10 = vshrl.u32 %v1043_v27, 16  ;;  %v1069_v3 = vand.u32 65535, %v1039_v8 }
  0xf3   :  { %v828_v35 = vmul.f32 %v827_v37, %v812_v9  ;;  %v837_v61 = vxor.u32 2147483648, %v820_v53  ;;  %v1012_v9 = vshrl.u32 %v1452_v34, %v2150_v32  ;;  %v2209_v12 = vmul.u32 %v1070_v0, %v1045_v24 }
  0xf4   :  { %vm944_vm8 = vcmp.lt.s32.totalorder %v943_v23, 0  ;;  %v945_v28 = vsub.s32 0, %v943_v23  ;;  %v1049_v26 = vmul.u32 %v1047_v48, %v1045_v24  ;;  %v1050_v13 = vmul.u32 %v1048_v10, %v1045_v24 }
  0xf5   :  { %v834_v54 = vxor.u32 2147483648, %v828_v35  ;;  %v838_v59 = vsel %vm836_vm6, %v837_v61, %v828_v35  ;;  %v2213_v62 = vadd.f32 %v1484_v5, %v51_v22  ;;  %v935_v44 = vadd.s32 %v2140_v19, %v2144_v18 }
  0xf6   :  { %v946_v29 = vsel %vm944_vm8, %v945_v28, %v943_v23  ;;  %v1051_v32 = vmul.u32 %v1047_v48, %v1046_v21  ;;  %v1032_v41 = vsel %vm1028_vm1, %v1012_v9, %v2170_v25  ;;  %v1052_v11 = vmul.u32 %v1048_v10, %v1046_v21 }
  0xf7   :  { %v835_v33 = vsel %vm833_vm7, %v820_v53, %v834_v54  ;;  %v947_v16 = vclz %v946_v29  ;;  %v1053_v47 = vshll.u32 %v1050_v13, 16  ;;  %v1033_v7 = vsel %vm1031_vm2, %v1021_v43, 2102212464 }
  0xf8   :  { %v839_v17 = vsel %vm832_vm5, %v835_v33, %v838_v59  ;;  %v1055_v4 = vshll.u32 %v1051_v32, 16  ;;  %v1071_v60 = vmul.u32 %v1069_v3, %v1045_v24  ;;  %v1073_v5 = vmul.u32 %v1069_v3, %v1046_v21 }
  0xf9   :  { %v840_v50 = vsel %vm829_vm9, nan, %v839_v17  ;;  %v1350_v46 = vadd.s32 4294967294, %v947_v16  ;;  %vm1057_vm11 = vc.u32 %v1049_v26, %v1053_v47  ;;  %v1059_v6 = vadd.s32 %v1053_v47, %v1049_v26 }
  0xfa   :  { %1310 = vst [vmem:[#allocation7 + $0x20] sm:$0xff] %v840_v50  ;;  %v1075_v19 = vshll.u32 %v2209_v12, 16  ;;  %v1058_v55 = vsel %vm1057_vm11, 1, %v1458_v58  ;;  %v1074_v49 = vmul.u32 %v1070_v0, %v1046_v21  ;;  %v1154_v25 = vand.u32 2139095040, %v2213_v62 }
  0xfb   :  { %vm1351_vm10 = vcmp.lt.s32.totalorder %v1350_v46, 0  ;;  %v1060_v37 = vadd.s32 %v1058_v55, %v1052_v11  ;;  %v1034_v43 = vsel %vm1030_vm3, %v2175_v20, %v1033_v7  ;;  %v1054_v63 = vshrl.u32 %v1050_v13, 16 }
  0xfc   :  { %v950_v18 = vsel %vm1351_vm10, 0, %v1350_v46  ;;  %vm1061_vm12 = vc.u32 %v1059_v6, %v1055_v4  ;;  %v1077_v15 = vshll.u32 %v1073_v5, 16  ;;  %vm1079_vm13 = vc.u32 %v1071_v60, %v1075_v19 }
  0xfd   :  { %v951_v56 = vsub.s32 32, %v950_v18  ;;  %v952_v14 = vshll.u32 %v943_v23, %v950_v18  ;;  %v955_v53 = vsub.s32 4294967266, %v950_v18  ;;  %v1062_v35 = vsel %vm1061_vm12, 1, %v1458_v58 }
  0xfe   :  { %v1064_v61 = vadd.s32 %v1062_v35, %v1060_v37  ;;  %v1080_v24 = vsel %vm1079_vm13, 1, %v1458_v58  ;;  %v1081_v27 = vadd.s32 %v1075_v19, %v1071_v60  ;;  %v1155_v21 = vshrl.u32 %v1154_v25, 23 }
  0xff   :  { %v953_v8 = vshrl.u32 %v935_v44, %v951_v56  ;;  %v956_v31 = vadd.s32 127, %v955_v53  ;;  %v1056_v54 = vshrl.u32 %v1051_v32, 16  ;;  %v1082_v59 = vadd.s32 %v1080_v24, %v1074_v49 }
 0x100   :  { %v1065_v28 = vadd.s32 %v1064_v61, %v1054_v63  ;;  %v1076_v20 = vshrl.u32 %v2209_v12, 16  ;;  %vm1083_vm14 = vc.u32 %v1081_v27, %v1077_v15  ;;  %v1355_v22 = vadd.s32 4294967169, %v1155_v21 }
 0x101   :  { %v954_v23 = vor.u32 %v953_v8, %v952_v14  ;;  %v957_v0 = vshll.u32 %v956_v31, 23  ;;  %v1084_v10 = vsel %vm1083_vm14, 1, %v1458_v58  ;;  %v1151_v33 = vand.u32 2147483647, %v2213_v62 }
 0x102   :  { %v965_v29 = vsub.s32 4, %v2184_v45  ;;  %v1078_v3 = vshrl.u32 %v1073_v5, 16  ;;  %v1086_v17 = vadd.s32 %v1084_v10, %v1082_v59  ;;  %v1161_v16 = vadd.s32 1, %v1355_v22 }
 0x103   :  { %v958_v9 = vor.u32 4788187, %v957_v0  ;;  %v961_v48 = vcvt.s32.f32 %v954_v23  ;;  %v2234_v13 = vadd.s32 %v1065_v28, %v1056_v54  ;;  %v2236_v50 = vadd.s32 %v1081_v27, %v1077_v15 }
 0x104   :  { %v1035_v12 = vsel %vm1029_vm4, %v1032_v41, %v1034_v43  ;;  %v1087_v44 = vadd.s32 %v1086_v17, %v1076_v20  ;;  %vm1162_vm15 = vcmp.gt.s32.totalorder %v1161_v16, 0  ;;  %vm843_vm0 = vcmp.lt.s32.totalorder %v1948_v30, 0 }
 0x105   :  { %v959_v26 = vand.u32 2147483647, %v958_v9  ;;  %v1158_v46 = vand.u32 8388607, %v1151_v33  ;;  %v1163_v11 = vsel %vm1162_vm15, %v1161_v16, 0  ;;  %v966_v47 = vsel %vm843_vm0, %v965_v29, %v2184_v45 }
 0x106   :  { %v1088_v7 = vadd.s32 %v1087_v44, %v1078_v3  ;;  %v1165_v4 = vand.u32 31, %v1163_v11  ;;  %vm2246_vm1 = vcmp.le.f32.partialorder %v841_v2, 0.7853982  ;;  %v1089_v41 = vmul.u32 %v2182_v1, %v1035_v12 }
 0x107   :  { %v962_v32 = vmul.f32 %v961_v48, %v959_v26  ;;  %vm1091_vm2 = vc.u32 %v2234_v13, %v2236_v50  ;;  %v968_v45 = vsel %vm2246_vm1, 0, %v966_v47  ;;  %v1159_v18 = vor.u32 8388608, %v1158_v46 }
 0x108   :  { %v1092_v5 = vadd.s32 1, %v1088_v7  ;;  %v2253_v6 = vsub.s32 32, %v1165_v4  ;;  %v2260_v49 = vshrl.u32 %v1163_v11, 5  ;;  %v1171_v1 = vshll.u32 %v1453_v36, %v1165_v4 }
 0x109   :  { %v963_v52 = vxor.u32 2147483648, %v962_v32  ;;  %v1174_v14 = vshll.u32 %v1454_v38, %v1165_v4  ;;  %v1177_v53 = vshll.u32 %v1455_v40, %v1165_v4  ;;  %v1180_v15 = vshll.u32 %v1456_v42, %v1165_v4 }
 0x10a   :  { %v1093_v55 = vsel %vm1091_vm2, %v1092_v5, %v1088_v7  ;;  %v1172_v37 = vshrl.u32 %v1454_v38, %v2253_v6  ;;  %v1175_v43 = vshrl.u32 %v1455_v40, %v2253_v6  ;;  %v1178_v63 = vshrl.u32 %v1456_v42, %v2253_v6 }
 0x10b   :  { %v964_v19 = vsel %vm843_vm0, %v963_v52, %v962_v32  ;;  %v1094_v56 = vadd.s32 %v1093_v55, %v1089_v41  ;;  %v985_v35 = vadd.s32 3, %v968_v45  ;;  %v1168_v24 = vshll.u32 %v1452_v34, %v1165_v4 }
 0x10c   :  { %v967_v2 = vsel %vm2246_vm1, %v1948_v30, %v964_v19  ;;  %v1169_v27 = vshrl.u32 %v1453_v36, %v2253_v6  ;;  %v1181_v38 = vshrl.u32 %v1457_v51, %v2253_v6  ;;  %v2277_v21 = vshll.u32 %v1159_v18, 8 }
 0x10d   :  { %v969_v25 = vmul.f32 %v967_v2, %v967_v2  ;;  %v1095_v61 = vadd.s32 536870912, %v1094_v56  ;;  %v1179_v54 = vor.u32 %v1178_v63, %v1177_v53  ;;  %v2281_v42 = vor.u32 %v1172_v37, %v1171_v1 }
 0x10e   :  { %v2283_v59 = vor.u32 %v1175_v43, %v1174_v14  ;;  %v1182_v28 = vor.u32 %v1181_v38, %v1180_v15  ;;  %vm1186_vm3 = vcmp.lt.s32.totalorder %v2260_v49, 4  ;;  %vm1183_vm4 = vcmp.lt.s32.totalorder %v2260_v49, 1 }
 0x10f   :  { %v970_v8 = vmul.f32 -0.001358992, %v969_v25  ;;  %v977_v31 = vmul.f32 -0.00019511016, %v969_v25  ;;  %v2279_v0 = vshrl.u32 %v1095_v61, 30  ;;  %v986_v51 = vand.u32 3, %v985_v35 }
 0x110   :  { %v2288_v9 = vor.u32 %v1169_v27, %v1168_v24  ;;  %vm1185_vm5 = vcmp.lt.s32.totalorder %v2260_v49, 3  ;;  %v1192_v3 = vsel %vm1186_vm3, %v1179_v54, 920167782  ;;  %vm1184_vm6 = vcmp.lt.s32.totalorder %v2260_v49, 2 }
 0x111   :  { %v971_v40 = vadd.f32 0.041655596, %v970_v8  ;;  %v978_v23 = vadd.f32 0.008332121, %v977_v31  ;;  %v1097_v36 = vshll.u32 %v2279_v0, 30  ;;  %v1195_v17 = vsel %vm1183_vm4, %v2281_v42, %v2283_v59 }
 0x112   :  { %v1196_v16 = vsel %vm1186_vm3, %v1182_v28, 1326507024  ;;  %v1200_v26 = vand.u32 65535, %v2277_v21  ;;  %v1191_v46 = vsel %vm1183_vm4, %v2288_v9, %v2281_v42  ;;  %v1193_v11 = vsel %vm1185_vm5, %v2283_v59, %v1192_v3 }
 0x113   :  { %v972_v20 = vmul.f32 %v971_v40, %v969_v25  ;;  %v979_v22 = vmul.f32 %v978_v23, %v969_v25  ;;  %v1098_v29 = vsub.s32 %v1094_v56, %v1097_v36  ;;  %v1197_v47 = vsel %vm1185_vm5, %v1179_v54, %v1196_v16 }
 0x114   :  { %v1201_v7 = vshrl.u32 %v2277_v21, 16  ;;  %v1198_v41 = vsel %vm1184_vm6, %v1195_v17, %v1197_v47  ;;  %vm991_vm8 = vcmp.eq.s32.totalorder %v986_v51, 2  ;;  %vm984_vm9 = vweird.f32 %v1948_v30 }
 0x115   :  { %v973_v48 = vadd.f32 -0.4999988, %v972_v20  ;;  %v980_v10 = vadd.f32 -0.16666654, %v979_v22  ;;  %vm1099_vm7 = vcmp.lt.s32.totalorder %v1098_v29, 0  ;;  %v1100_v32 = vsub.s32 0, %v1098_v29 }
 0x116   :  { %v1202_v19 = vand.u32 65535, %v1198_v41  ;;  %v1203_v45 = vshrl.u32 %v1198_v41, 16  ;;  %vm987_vm10 = vcmp.lt.s32.totalorder %v986_v51, 2  ;;  %vm988_vm11 = vcmp.eq.s32.totalorder %v986_v51, 0 }
 0x117   :  { %v974_v12 = vmul.f32 %v973_v48, %v969_v25  ;;  %v981_v44 = vmul.f32 %v980_v10, %v969_v25  ;;  %v1101_v52 = vsel %vm1099_vm7, %v1100_v32, %v1098_v29  ;;  %v1194_v25 = vsel %vm1184_vm6, %v1191_v46, %v1193_v11 }
 0x118   :  { %v1102_v5 = vclz %v1101_v52  ;;  %v1205_v56 = vmul.u32 %v1203_v45, %v1200_v26  ;;  %v1090_v37 = vadd.s32 %v2236_v50, %v2234_v13  ;;  %v1206_v43 = vmul.u32 %v1202_v19, %v1201_v7 }
 0x119   :  { %v975_v4 = vadd.f32 1.0, %v974_v12  ;;  %v982_v60 = vadd.f32 1.0, %v981_v44  ;;  %v1204_v63 = vmul.u32 %v1202_v19, %v1200_v26  ;;  %v1207_v35 = vmul.u32 %v1203_v45, %v1201_v7 }
 0x11a   :  { %v1353_v1 = vadd.s32 4294967294, %v1102_v5  ;;  %v1208_v15 = vshll.u32 %v1205_v56, 16  ;;  %v1225_v61 = vshrl.u32 %v1194_v25, 16  ;;  %v1210_v54 = vshll.u32 %v1206_v43, 16 }
 0x11b   :  { %v983_v18 = vmul.f32 %v982_v60, %v967_v2  ;;  %v992_v55 = vxor.u32 2147483648, %v975_v4  ;;  %v1224_v2 = vand.u32 65535, %v1194_v25  ;;  %v1167_v50 = vshrl.u32 %v1452_v34, %v2253_v6 }
 0x11c   :  { %vm1354_vm12 = vcmp.lt.s32.totalorder %v1353_v1, 0  ;;  %vm1212_vm13 = vc.u32 %v1204_v63, %v1208_v15  ;;  %v1214_v22 = vadd.s32 %v1208_v15, %v1204_v63  ;;  %v1227_v51 = vmul.u32 %v1225_v61, %v1200_v26 }
 0x11d   :  { %v989_v14 = vxor.u32 2147483648, %v983_v18  ;;  %v993_v53 = vsel %vm991_vm8, %v992_v55, %v983_v18  ;;  %v1105_v31 = vsel %vm1354_vm12, 0, %v1353_v1  ;;  %v1213_v20 = vsel %vm1212_vm13, 1, %v1458_v58 }
 0x11e   :  { %v1106_v27 = vsub.s32 32, %v1105_v31  ;;  %v1107_v38 = vshll.u32 %v1098_v29, %v1105_v31  ;;  %v1110_v40 = vsub.s32 4294967266, %v1105_v31  ;;  %v1226_v36 = vmul.u32 %v1224_v2, %v1200_v26 }
 0x11f   :  { %v990_v8 = vsel %vm988_vm11, %v975_v4, %v989_v14  ;;  %v1215_v29 = vadd.s32 %v1213_v20, %v1207_v35  ;;  %v1228_v3 = vmul.u32 %v1224_v2, %v1201_v7  ;;  %v1209_v17 = vshrl.u32 %v1205_v56, 16 }
 0x120   :  { %v994_v24 = vsel %vm987_vm10, %v990_v8, %v993_v53  ;;  %v1108_v28 = vshrl.u32 %v1090_v37, %v1106_v27  ;;  %v1111_v13 = vadd.s32 127, %v1110_v40  ;;  %vm1216_vm14 = vc.u32 %v1214_v22, %v1210_v54 }
 0x121   :  { %v995_v23 = vsel %vm984_vm9, nan, %v994_v24  ;;  %v1229_v30 = vmul.u32 %v1225_v61, %v1201_v7  ;;  %v1230_v16 = vshll.u32 %v1227_v51, 16  ;;  %v1217_v32 = vsel %vm1216_vm14, 1, %v1458_v58 }
 0x122   :  { %1311 = vst [vmem:[#allocation7 + $0x28] sm:$0xff] %v995_v23  ;;  %v1109_v48 = vor.u32 %v1108_v28, %v1107_v38  ;;  %v1112_v10 = vshll.u32 %v1111_v13, 23  ;;  %v1232_v34 = vshll.u32 %v1228_v3, 16  ;;  %v1188_v6 = vsel %vm1186_vm3, %v2283_v59, 2102212464 }
 0x123   :  { %v1219_v46 = vadd.s32 %v1217_v32, %v1215_v29  ;;  %vm1234_vm15 = vc.u32 %v1226_v36, %v1230_v16  ;;  %v1236_v26 = vadd.s32 %v1230_v16, %v1226_v36  ;;  %v1211_v47 = vshrl.u32 %v1206_v43, 16 }
 0x124   :  { %v1113_v12 = vor.u32 4788187, %v1112_v10  ;;  %v1116_v44 = vcvt.s32.f32 %v1109_v48  ;;  %v1235_v4 = vsel %vm1234_vm15, 1, %v1458_v58  ;;  %v1231_v52 = vshrl.u32 %v1227_v51, 16 }
 0x125   :  { %v1220_v60 = vadd.s32 %v1219_v46, %v1209_v17  ;;  %v1237_v7 = vadd.s32 %v1235_v4, %v1229_v30  ;;  %vm1238_vm0 = vc.u32 %v1236_v26, %v1232_v34  ;;  %v1187_v5 = vsel %vm1183_vm4, %v1167_v50, %v2288_v9 }
 0x126   :  { %v1114_v11 = vand.u32 2147483647, %v1113_v12  ;;  %v1189_v59 = vsel %vm1185_vm5, %v2281_v42, %v1188_v6  ;;  %v1239_v19 = vsel %vm1238_vm0, 1, %v1458_v58  ;;  %vm998_vm1 = vcmp.lt.s32.totalorder %v2016_v39, 0 }
 0x127   :  { %v1120_v45 = vsub.s32 4, %v2279_v0  ;;  %v1233_v18 = vshrl.u32 %v1228_v3, 16  ;;  %v1241_v55 = vadd.s32 %v1239_v19, %v1237_v7  ;;  %vm2340_vm2 = vcmp.le.f32.partialorder %v996_v57, 0.7853982 }
 0x128   :  { %v1117_v41 = vmul.f32 %v1116_v44, %v1114_v11  ;;  %v1221_v9 = vadd.s32 %v1220_v60, %v1211_v47  ;;  %v1240_v56 = vadd.s32 %v1236_v26, %v1232_v34  ;;  %v1190_v42 = vsel %vm1184_vm6, %v1187_v5, %v1189_v59 }
 0x129   :  { %v1242_v14 = vadd.s32 %v1241_v55, %v1231_v52  ;;  %v1121_v53 = vsel %vm998_vm1, %v1120_v45, %v2279_v0  ;;  %v1244_v57 = vmul.u32 %v2277_v21, %v1190_v42  ;;  %vm1139_vm8 = vweird.f32 %v2016_v39 }
 0x12a   :  { %v1118_v25 = vxor.u32 2147483648, %v1117_v41  ;;  %vm1246_vm3 = vc.u32 %v1221_v9, %v1240_v56  ;;  %v1123_v2 = vsel %vm2340_vm2, 0, %v1121_v53  ;;  %v1245_v6 = vadd.s32 %v1240_v56, %v1221_v9 }
 0x12b   :  { %v1243_v43 = vadd.s32 %v1242_v14, %v1233_v18  ;;  %v1140_v0 = vadd.s32 3, %v1123_v2  ;;  %vm1153_vm10 = vcmp.lt.s32.totalorder %v2213_v62, 0  ;;  %vm1152_vm11 = vcmp.le.f32.partialorder %v1151_v33, 0.7853982 }
 0x12c   :  { %v1119_v58 = vsel %vm998_vm1, %v1118_v25, %v1117_v41  ;;  %vm1294_vm15 = vweird.f32 %v2213_v62 }
 0x12d   :  { %v1122_v37 = vsel %vm2340_vm2, %v2016_v39, %v1119_v58  ;;  %v1247_v15 = vadd.s32 1, %v1243_v43  ;;  %v1141_v13 = vand.u32 3, %v1140_v0 }
 0x12e   :  { %v1124_v63 = vmul.f32 %v1122_v37, %v1122_v37 }
 0x12f   :  { %v1248_v31 = vsel %vm1246_vm3, %v1247_v15, %v1243_v43  ;;  %vm1146_vm4 = vcmp.eq.s32.totalorder %v1141_v13, 2  ;;  %vm1143_vm6 = vcmp.eq.s32.totalorder %v1141_v13, 0  ;;  %vm1142_vm7 = vcmp.lt.s32.totalorder %v1141_v13, 2 }
 0x130   :  { %v1125_v8 = vmul.f32 -0.001358992, %v1124_v63  ;;  %v1132_v49 = vmul.f32 -0.00019511016, %v1124_v63  ;;  %v1249_v24 = vadd.s32 %v1248_v31, %v1244_v57 }
 0x132   :  { %v1126_v35 = vadd.f32 0.041655596, %v1125_v8  ;;  %v1133_v61 = vadd.f32 0.008332121, %v1132_v49  ;;  %v1250_v40 = vadd.s32 536870912, %v1249_v24 }
 0x134   :  { %v1127_v27 = vmul.f32 %v1126_v35, %v1124_v63  ;;  %v1134_v38 = vmul.f32 %v1133_v61, %v1124_v63  ;;  %v1251_v28 = vshrl.u32 %v1250_v40, 30 }
 0x136   :  { %v1128_v23 = vadd.f32 -0.4999988, %v1127_v27  ;;  %v1135_v54 = vadd.f32 -0.16666654, %v1134_v38  ;;  %v1252_v20 = vshll.u32 %v1251_v28, 30  ;;  %v1275_v19 = vsub.s32 4, %v1251_v28 }
 0x138   :  { %v1129_v21 = vmul.f32 %v1128_v23, %v1124_v63  ;;  %v1136_v50 = vmul.f32 %v1135_v54, %v1124_v63  ;;  %v1253_v51 = vsub.s32 %v1249_v24, %v1252_v20  ;;  %v1276_v55 = vsel %vm1153_vm10, %v1275_v19, %v1251_v28 }
 0x139   :  { %v1278_v9 = vsel %vm1152_vm11, 0, %v1276_v55 }
 0x13a   :  { %v1130_v22 = vadd.f32 1.0, %v1129_v21  ;;  %v1137_v36 = vadd.f32 1.0, %v1136_v50  ;;  %vm1254_vm5 = vcmp.lt.s32.totalorder %v1253_v51, 0  ;;  %v1255_v29 = vsub.s32 0, %v1253_v51 }
 0x13b   :  { %v1295_v53 = vadd.s32 3, %v1278_v9 }
 0x13c   :  { %v1138_v48 = vmul.f32 %v1137_v36, %v1122_v37  ;;  %v1147_v10 = vxor.u32 2147483648, %v1130_v22  ;;  %v1256_v30 = vsel %vm1254_vm5, %v1255_v29, %v1253_v51 }
 0x13d   :  { %v1257_v16 = vclz %v1256_v30  ;;  %v1296_v15 = vand.u32 3, %v1295_v53 }
 0x13e   :  { %v1144_v3 = vxor.u32 2147483648, %v1138_v48  ;;  %v1148_v17 = vsel %vm1146_vm4, %v1147_v10, %v1138_v48 }
 0x13f   :  { %v1356_v32 = vadd.s32 4294967294, %v1257_v16  ;;  %vm1301_vm12 = vcmp.eq.s32.totalorder %v1296_v15, 2  ;;  %vm1298_vm13 = vcmp.eq.s32.totalorder %v1296_v15, 0  ;;  %vm1297_vm14 = vcmp.lt.s32.totalorder %v1296_v15, 2 }
 0x140   :  { %v1145_v12 = vsel %vm1143_vm6, %v1130_v22, %v1144_v3 }
 0x141   :  { %v1149_v44 = vsel %vm1142_vm7, %v1145_v12, %v1148_v17  ;;  %vm1357_vm9 = vcmp.lt.s32.totalorder %v1356_v32, 0 }
 0x142   :  { %v1150_v34 = vsel %vm1139_vm8, nan, %v1149_v44  ;;  %v1260_v46 = vsel %vm1357_vm9, 0, %v1356_v32 }
 0x143   :  { %1312 = vst [vmem:[#allocation7 + $0x30] sm:$0xff] %v1150_v34  ;;  %v1261_v26 = vsub.s32 32, %v1260_v46  ;;  %v1262_v11 = vshll.u32 %v1253_v51, %v1260_v46  ;;  %v1265_v47 = vsub.s32 4294967266, %v1260_v46 }
 0x145   :  { %v1263_v4 = vshrl.u32 %v1245_v6, %v1261_v26  ;;  %v1266_v60 = vadd.s32 127, %v1265_v47 }
 0x147   :  { %v1264_v52 = vor.u32 %v1263_v4, %v1262_v11  ;;  %v1267_v7 = vshll.u32 %v1266_v60, 23 }
 0x149   :  { %v1268_v41 = vor.u32 4788187, %v1267_v7  ;;  %v1271_v5 = vcvt.s32.f32 %v1264_v52 }
 0x14b   :  { %v1269_v59 = vand.u32 2147483647, %v1268_v41 }
 0x14d   :  { %v1272_v39 = vmul.f32 %v1271_v5, %v1269_v59 }
 0x14f   :  { %v1273_v45 = vxor.u32 2147483648, %v1272_v39 }
 0x151   :  { %v1274_v18 = vsel %vm1153_vm10, %v1273_v45, %v1272_v39 }
 0x152   :  { %v1277_v1 = vsel %vm1152_vm11, %v2213_v62, %v1274_v18 }
 0x153   :  { %v1279_v25 = vmul.f32 %v1277_v1, %v1277_v1 }
 0x155   :  { %v1280_v56 = vmul.f32 -0.001358992, %v1279_v25  ;;  %v1287_v42 = vmul.f32 -0.00019511016, %v1279_v25 }
 0x157   :  { %v1281_v14 = vadd.f32 0.041655596, %v1280_v56  ;;  %v1288_v58 = vadd.f32 0.008332121, %v1287_v42 }
 0x159   :  { %v1282_v37 = vmul.f32 %v1281_v14, %v1279_v25  ;;  %v1289_v43 = vmul.f32 %v1288_v58, %v1279_v25 }
 0x15b   :  { %v1283_v63 = vadd.f32 -0.4999988, %v1282_v37  ;;  %v1290_v57 = vadd.f32 -0.16666654, %v1289_v43 }
 0x15d   :  { %v1284_v2 = vmul.f32 %v1283_v63, %v1279_v25  ;;  %v1291_v8 = vmul.f32 %v1290_v57, %v1279_v25 }
 0x15f   :  { %v1285_v33 = vadd.f32 1.0, %v1284_v2  ;;  %v1292_v49 = vadd.f32 1.0, %v1291_v8 }
 0x161   :  { %v1293_v31 = vmul.f32 %v1292_v49, %v1277_v1  ;;  %v1302_v35 = vxor.u32 2147483648, %v1285_v33 }
 0x163   :  { %v1299_v61 = vxor.u32 2147483648, %v1293_v31  ;;  %v1303_v24 = vsel %vm1301_vm12, %v1302_v35, %v1293_v31 }
 0x165   :  { %v1300_v0 = vsel %vm1298_vm13, %v1285_v33, %v1299_v61 }
 0x166   :  { %v1304_v27 = vsel %vm1297_vm14, %v1300_v0, %v1303_v24 }
 0x167   :  { %v1305_v38 = vsel %vm1294_vm15, nan, %v1304_v27 }
 0x168   :  { %1313 = vst [vmem:[#allocation7 + $0x38] sm:$0xff] %v1305_v38 }
 0x169   :  { %1326 = dma.vmem_to_hbm [thread:$0]  %s1319_s1, 1024, %s1321_s23, [#allocation4], %s1449_s17, %s1449_s17, %s1450_s18  }
 0x16a   :  { %1446 = dma.done.wait [#allocation4], 1024  }
 0x16b   :  { %1447 = vsyncadd [#allocation4], 4294966272 }
 0x16c   :  { %1331 = vsyncpa [#allocation3], 1 }
 0x16d   :  { %1332 = vsyncpa [#allocation6], 1 }
 0x16e   :  { %1333 = vsyncpa [#allocation4], 1 }

</bundles_post_ra>
